<compile_context>
chip_gen: v6e
topology: v6e:2x2x1
jax: 0.10.0
libtpu: 0.0.40
codegen_flags: <defaults>
</compile_context>

<pallas_src>
import jax
import jax.numpy as jnp
from jax.experimental import pallas as pl
from jax.experimental.pallas import tpu as pltpu


def _round_up(x, m):
    return (x + m - 1) // m * m


def _pick_time_chunk(seq_len, max_chunk=16):
    """Largest divisor of seq_len that is <= max_chunk (time-chunk per grid step)."""
    for c in range(min(seq_len, max_chunk), 0, -1):
        if seq_len % c == 0:
            return c
    return 1


# -----------------------------------------------------------------------------
# Pallas kernel: the recurrent part of one LSTM layer.
# Grid axis 0 iterates over time chunks (sequential recurrence -> "arbitrary").
# -----------------------------------------------------------------------------
def lstm_recurrence_kernel(xw_ref, whh_ref, out_ref, hN_ref, cN_ref,
                           h_scr, c_scr):
    """
    xw_ref : (T, Bp, 4*Hp)  precomputed x_t @ W_ih + (b_ih + b_hh) for this chunk
    whh_ref: (Hp, 4*Hp)     hidden->gates weights (padded, pre-transposed)
    out_ref: (T, Bp, Hp)    h_t for every step of this chunk (layer output seq)
    hN_ref : (Bp, Hp)       final hidden (written on the last chunk only)
    cN_ref : (Bp, Hp)       final cell   (written on the last chunk only)
    h_scr  : (Bp, Hp)       running hidden state, resident across chunks
    c_scr  : (Bp, Hp)       running cell state, resident across chunks
    """
    chunk = pl.program_id(0)

    @pl.when(chunk == 0)
    def _():
        h_scr[...] = jnp.zeros_like(h_scr)
        c_scr[...] = jnp.zeros_like(c_scr)

    hp = h_scr.shape[1]
    whh = whh_ref[...]
    n_steps = xw_ref.shape[0]

    def step(t, carry):
        h, c = carry
        # Gates: precomputed input projection + recurrent projection.
        gates = xw_ref[t] + jnp.dot(h, whh, preferred_element_type=jnp.float32)
        # PyTorch gate order: i, f, g, o.  Slices are lane-aligned (hp % 128 == 0).
        i_g = jax.nn.sigmoid(gates[:, 0 * hp:1 * hp])
        f_g = jax.nn.sigmoid(gates[:, 1 * hp:2 * hp])
        g_g = jnp.tanh(gates[:, 2 * hp:3 * hp])
        o_g = jax.nn.sigmoid(gates[:, 3 * hp:4 * hp])
        c_new = f_g * c + i_g * g_g
        h_new = o_g * jnp.tanh(c_new)
        out_ref[t] = h_new
        return h_new, c_new

    h_fin, c_fin = jax.lax.fori_loop(
        0, n_steps, step, (h_scr[...], c_scr[...]), unroll=True)

    # Carry state to the next chunk (one store per chunk, not per step).
    h_scr[...] = h_fin
    c_scr[...] = c_fin

    @pl.when(chunk == pl.num_programs(0) - 1)
    def _():
        hN_ref[...] = h_fin
        cN_ref[...] = c_fin


def lstm_recurrence(xw, w_hh_pad, *, time_chunk):
    """Run the recurrence of one LSTM layer over the full (chunked) sequence.

    xw       : (S, Bp, 4*Hp) precomputed input projection (+ fused bias)
    w_hh_pad : (Hp, 4*Hp)
    Returns (out_seq (S, Bp, Hp), h_n (Bp, Hp), c_n (Bp, Hp)).
    """
    S, Bp, G = xw.shape
    Hp = G // 4
    assert S % time_chunk == 0
    num_chunks = S // time_chunk

    grid_spec = pltpu.PrefetchScalarGridSpec(
        num_scalar_prefetch=0,
        grid=(num_chunks,),
        in_specs=[
            pl.BlockSpec((time_chunk, Bp, G), lambda c: (c, 0, 0)),   # xw chunk
            pl.BlockSpec((Hp, G), lambda c: (0, 0)),                  # W_hh (constant)
        ],
        out_specs=[
            pl.BlockSpec((time_chunk, Bp, Hp), lambda c: (c, 0, 0)),  # output seq
            pl.BlockSpec((Bp, Hp), lambda c: (0, 0)),                 # final h
            pl.BlockSpec((Bp, Hp), lambda c: (0, 0)),                 # final c
        ],
        scratch_shapes=[
            pltpu.VMEM((Bp, Hp), jnp.float32),                        # running h
            pltpu.VMEM((Bp, Hp), jnp.float32),                        # running c
        ],
    )

    return pl.pallas_call(
        lstm_recurrence_kernel,
        out_shape=(
            jax.ShapeDtypeStruct((S, Bp, Hp), jnp.float32),
            jax.ShapeDtypeStruct((Bp, Hp), jnp.float32),
            jax.ShapeDtypeStruct((Bp, Hp), jnp.float32),
        ),
        grid_spec=grid_spec,
        compiler_params=pltpu.CompilerParams(
            dimension_semantics=("arbitrary",),      # time recurrence is serial
            vmem_limit_bytes=64 * 1024 * 1024,
        ),
    )(xw, w_hh_pad)


# -----------------------------------------------------------------------------
# Parameter padding helpers (zero padding; provably inert, see header comment).
# -----------------------------------------------------------------------------
def _pad_gate_cols(w, H, Hp):
    """(rows, 4H) -> (rows, 4*Hp): pad each gate's column block to Hp lanes."""
    rows = w.shape[0]
    w4 = w.reshape(rows, 4, H)
    w4 = jnp.pad(w4, ((0, 0), (0, 0), (0, Hp - H)))
    return w4.reshape(rows, 4 * Hp)


def _pad_gate_bias(b, H, Hp):
    """(4H,) -> (4*Hp,)"""
    b4 = jnp.pad(b.reshape(4, H), ((0, 0), (0, Hp - H)))
    return b4.reshape(4 * Hp)


# -----------------------------------------------------------------------------
# Encoder.forward : embed -> dropout (eval identity) -> multi-layer LSTM.
# Returns (hidden, cell), each (n_layers, B, H), matching the PyTorch module.
# -----------------------------------------------------------------------------
def encoder_forward(src, params, *, time_chunk=None):
    emb_table = params["embedding"]                 # (vocab, E)
    S, B = src.shape
    H = params["lstm"][0]["w_hh"].shape[0]
    Hp = _round_up(H, 128)                          # lane-aligned gate width
    Bp = _round_up(B, 8)                            # sublane-aligned batch
    if time_chunk is None:
        time_chunk = _pick_time_chunk(S)

    embedded = jnp.take(emb_table, src, axis=0)     # (S, B, E) -- gather glue
    # dropout: eval-mode identity.
    x = jnp.pad(embedded, ((0, 0), (0, Bp - B), (0, 0)))        # (S, Bp, E)

    hiddens, cells = [], []
    for layer in params["lstm"]:
        in_feat = x.shape[-1]
        w_ih = _pad_gate_cols(layer["w_ih"], H, Hp)             # (in_dim, 4*Hp)
        w_ih = jnp.pad(w_ih, ((0, in_feat - w_ih.shape[0]), (0, 0)))
        w_hh = _pad_gate_cols(layer["w_hh"], H, Hp)             # (H, 4*Hp)
        w_hh = jnp.pad(w_hh, ((0, Hp - H), (0, 0)))             # (Hp, 4*Hp)
        bias = _pad_gate_bias(layer["bias"], H, Hp)             # (4*Hp,)

        # Input projection hoisted out of the recurrence: one batched matmul
        # over M = S*Bp rows, bias folded in for free.  (XLA glue.)
        xw = (x.reshape(S * Bp, in_feat) @ w_ih + bias).reshape(S, Bp, 4 * Hp)

        out_seq, h_n, c_n = lstm_recurrence(xw, w_hh, time_chunk=time_chunk)
        hiddens.append(h_n[:B, :H])
        cells.append(c_n[:B, :H])
        x = out_seq        # (S, Bp, Hp); inter-layer dropout: eval identity

    hidden = jnp.stack(hiddens, axis=0)             # (n_layers, B, H)
    cell = jnp.stack(cells, axis=0)                 # (n_layers, B, H)
    return hidden, cell


# -----------------------------------------------------------------------------
# Synthetic parameters (same shapes/semantics as the PyTorch module, with
# W_ih/W_hh stored pre-transposed so the math is x @ W).
# -----------------------------------------------------------------------------
def init_params(key, input_dim, emb_dim, hid_dim, n_layers):
    keys = jax.random.split(key, 1 + 4 * n_layers)
    params = {"embedding": jax.random.normal(keys[0], (input_dim, emb_dim),
                                             dtype=jnp.float32)}
    bound = 1.0 / float(hid_dim) ** 0.5
    lstm_layers = []
    for l in range(n_layers):
        in_dim = emb_dim if l == 0 else hid_dim
        k = keys[1 + 4 * l: 1 + 4 * (l + 1)]
        w_ih = jax.random.uniform(k[0], (in_dim, 4 * hid_dim),
                                  minval=-bound, maxval=bound, dtype=jnp.float32)
        w_hh = jax.random.uniform(k[1], (hid_dim, 4 * hid_dim),
                                  minval=-bound, maxval=bound, dtype=jnp.float32)
        b_ih = jax.random.uniform(k[2], (4 * hid_dim,),
                                  minval=-bound, maxval=bound, dtype=jnp.float32)
        b_hh = jax.random.uniform(k[3], (4 * hid_dim,),
                                  minval=-bound, maxval=bound, dtype=jnp.float32)
        lstm_layers.append({"w_ih": w_ih, "w_hh": w_hh, "bias": b_ih + b_hh})
    params["lstm"] = lstm_layers
    return params


# Plain-JAX reference (eval-mode PyTorch LSTM semantics) for a sanity check.
def _reference_encoder(src, params):
    emb = jnp.take(params["embedding"], src, axis=0)
    x = emb
    hs, cs = [], []
    for layer in params["lstm"]:
        w_ih, w_hh, b = layer["w_ih"], layer["w_hh"], layer["bias"]
        H = w_hh.shape[0]
        B = x.shape[1]

        def step(carry, x_t):
            h, c = carry
            g = x_t @ w_ih + h @ w_hh + b
            i = jax.nn.sigmoid(g[:, 0 * H:1 * H])
            f = jax.nn.sigmoid(g[:, 1 * H:2 * H])
            gg = jnp.tanh(g[:, 2 * H:3 * H])
            o = jax.nn.sigmoid(g[:, 3 * H:4 * H])
            c = f * c + i * gg
            h = o * jnp.tanh(c)
            return (h, c), h

        (h, c), ys = jax.lax.scan(
            step, (jnp.zeros((B, H), jnp.float32), jnp.zeros((B, H), jnp.float32)), x)
        hs.append(h)
        cs.append(c)
        x = ys
    return jnp.stack(hs, axis=0), jnp.stack(cs, axis=0)


if __name__ == "__main__":
    INPUT_DIM = 50      # vocab size
    EMB_DIM = 32
    HID_DIM = 32
    N_LAYERS = 2
    SEQ_LEN = 8
    BATCH = 2

    key = jax.random.PRNGKey(0)
    k_param, k_src = jax.random.split(key)
    params = init_params(k_param, INPUT_DIM, EMB_DIM, HID_DIM, N_LAYERS)
    src = jax.random.randint(k_src, (SEQ_LEN, BATCH), 0, INPUT_DIM,
                             dtype=jnp.int32)

    hidden, cell = encoder_forward(src, params)
    hidden = jax.block_until_ready(hidden)
    cell = jax.block_until_ready(cell)

    assert hidden.shape == (N_LAYERS, BATCH, HID_DIM)
    assert cell.shape == (N_LAYERS, BATCH, HID_DIM)
    assert bool(jnp.all(jnp.isfinite(hidden))) and bool(jnp.all(jnp.isfinite(cell)))

    # Numerical sanity check against a plain-JAX reference (loose tolerance to
    # allow for TPU default matmul precision differences).
    h_ref, c_ref = _reference_encoder(src, params)
    assert bool(jnp.allclose(hidden, h_ref, atol=5e-2, rtol=5e-2))
    assert bool(jnp.allclose(cell, c_ref, atol=5e-2, rtol=5e-2))

    print("KERNEL_OK")
</pallas_src>

<mosaic_0001>
module attributes {stable_mosaic.version = 11 : i64} {
  func.func @lstm_recurrence_kernel(%arg0: i32, %arg1: memref<8x8x512xf32, #tpu.memory_space<vmem>>, %arg2: memref<128x512xf32, #tpu.memory_space<vmem>>, %arg3: memref<8x8x128xf32, #tpu.memory_space<vmem>>, %arg4: memref<8x128xf32, #tpu.memory_space<vmem>>, %arg5: memref<8x128xf32, #tpu.memory_space<vmem>>, %arg6: memref<8x128xf32, #tpu.memory_space<vmem>>, %arg7: memref<8x128xf32, #tpu.memory_space<vmem>>) attributes {dimension_semantics = [#tpu.dimension_semantics<arbitrary>], iteration_bounds = array<i64: 1>, scalar_prefetch = 0 : i64, scratch_operands = 2 : i64, tpu.core_type = #tpu.core_type<tc>, window_params = [{transform_indices = @transform_0, window_bounds = array<i64: 8, 8, 512>}, {pipeline_mode = #tpu.pipeline_mode<synchronous>, transform_indices = @transform_1, window_bounds = array<i64: 128, 512>}, {transform_indices = @transform_2, window_bounds = array<i64: 8, 8, 128>}, {pipeline_mode = #tpu.pipeline_mode<synchronous>, transform_indices = @transform_3, window_bounds = array<i64: 8, 128>}, {pipeline_mode = #tpu.pipeline_mode<synchronous>, transform_indices = @transform_4, window_bounds = array<i64: 8, 128>}]} {
    %c0_i32 = arith.constant 0 : i32
    %0 = arith.cmpi eq, %arg0, %c0_i32 : i32
    %1 = arith.extui %0 : i1 to i32
    %c0_i32_0 = arith.constant 0 : i32
    %2 = arith.cmpi ne, %1, %c0_i32_0 : i32
    scf.if %2 {
      %cst_76 = arith.constant 0.000000e+00 : f32
      %283 = vector.broadcast %cst_76 : f32 to vector<8x128xf32>
      %c0_77 = arith.constant 0 : index
      %c0_78 = arith.constant 0 : index
      %284 = vector.load %arg6[%c0_77, %c0_78] : memref<8x128xf32, #tpu.memory_space<vmem>>, vector<8x128xf32>
      tpu.vector_store %arg6[%c0_77, %c0_78], %283 {strides = array<i32>} : memref<8x128xf32, #tpu.memory_space<vmem>>, vector<8x128xf32>,
      %cst_79 = arith.constant 0.000000e+00 : f32
      %285 = vector.broadcast %cst_79 : f32 to vector<8x128xf32>
      %c0_80 = arith.constant 0 : index
      %c0_81 = arith.constant 0 : index
      %286 = vector.load %arg7[%c0_80, %c0_81] : memref<8x128xf32, #tpu.memory_space<vmem>>, vector<8x128xf32>
      tpu.vector_store %arg7[%c0_80, %c0_81], %285 {strides = array<i32>} : memref<8x128xf32, #tpu.memory_space<vmem>>, vector<8x128xf32>,
    } else {
    }
    %c0 = arith.constant 0 : index
    %c0_1 = arith.constant 0 : index
    %3 = vector.load %arg2[%c0, %c0_1] : memref<128x512xf32, #tpu.memory_space<vmem>>, vector<128x512xf32>
    %c0_2 = arith.constant 0 : index
    %c0_3 = arith.constant 0 : index
    %4 = vector.load %arg6[%c0_2, %c0_3] : memref<8x128xf32, #tpu.memory_space<vmem>>, vector<8x128xf32>
    %c0_4 = arith.constant 0 : index
    %c0_5 = arith.constant 0 : index
    %5 = vector.load %arg7[%c0_4, %c0_5] : memref<8x128xf32, #tpu.memory_space<vmem>>, vector<8x128xf32>
    %c0_i32_6 = arith.constant 0 : i32
    %6 = arith.index_cast %c0_i32_6 : i32 to index
    %c0_7 = arith.constant 0 : index
    %c0_8 = arith.constant 0 : index
    %7 = vector.load %arg1[%6, %c0_7, %c0_8] : memref<8x8x512xf32, #tpu.memory_space<vmem>>, vector<1x8x512xf32>
    %8 = vector.shape_cast %7 : vector<1x8x512xf32> to vector<8x512xf32>
    %cst = arith.constant dense<0.000000e+00> : vector<8x512xf32>
    %9 = tpu.matmul %4, %3, %cst {dimension_numbers = #tpu.dot_dimension_numbers<[1], [0], [0], [1], [0, 0, 1, 1], [], []>} : vector<8x128xf32>, vector<128x512xf32>, vector<8x512xf32> -> vector<8x512xf32>
    %10 = arith.addf %8, %9 : vector<8x512xf32>
    %11 = vector.extract_strided_slice %10 {offsets = [0, 0], sizes = [8, 128], strides = [1, 1]} : vector<8x512xf32> to vector<8x128xf32>
    %12 = arith.negf %11 : vector<8x128xf32>
    %13 = math.exp %12 : vector<8x128xf32>
    %cst_9 = arith.constant 1.000000e+00 : f32
    %14 = vector.broadcast %cst_9 : f32 to vector<8x128xf32>
    %15 = arith.addf %14, %13 : vector<8x128xf32>
    %16 = arith.divf %14, %15 : vector<8x128xf32>
    %17 = vector.extract_strided_slice %10 {offsets = [0, 128], sizes = [8, 128], strides = [1, 1]} : vector<8x512xf32> to vector<8x128xf32>
    %18 = arith.negf %17 : vector<8x128xf32>
    %19 = math.exp %18 : vector<8x128xf32>
    %cst_10 = arith.constant 1.000000e+00 : f32
    %20 = vector.broadcast %cst_10 : f32 to vector<8x128xf32>
    %21 = arith.addf %20, %19 : vector<8x128xf32>
    %22 = arith.divf %20, %21 : vector<8x128xf32>
    %23 = vector.extract_strided_slice %10 {offsets = [0, 256], sizes = [8, 128], strides = [1, 1]} : vector<8x512xf32> to vector<8x128xf32>
    %24 = math.tanh %23 : vector<8x128xf32>
    %25 = vector.extract_strided_slice %10 {offsets = [0, 384], sizes = [8, 128], strides = [1, 1]} : vector<8x512xf32> to vector<8x128xf32>
    %26 = arith.negf %25 : vector<8x128xf32>
    %27 = math.exp %26 : vector<8x128xf32>
    %cst_11 = arith.constant 1.000000e+00 : f32
    %28 = vector.broadcast %cst_11 : f32 to vector<8x128xf32>
    %29 = arith.addf %28, %27 : vector<8x128xf32>
    %30 = arith.divf %28, %29 : vector<8x128xf32>
    %31 = arith.mulf %22, %5 : vector<8x128xf32>
    %32 = arith.mulf %16, %24 : vector<8x128xf32>
    %33 = arith.addf %31, %32 : vector<8x128xf32>
    %34 = math.tanh %33 : vector<8x128xf32>
    %35 = arith.mulf %30, %34 : vector<8x128xf32>
    %36 = arith.index_cast %c0_i32_6 : i32 to index
    %c0_12 = arith.constant 0 : index
    %c0_13 = arith.constant 0 : index
    %37 = vector.load %arg3[%36, %c0_12, %c0_13] : memref<8x8x128xf32, #tpu.memory_space<vmem>>, vector<1x8x128xf32>
    %38 = vector.shape_cast %37 : vector<1x8x128xf32> to vector<8x128xf32>
    %39 = vector.shape_cast %35 : vector<8x128xf32> to vector<1x8x128xf32>
    tpu.vector_store %arg3[%36, %c0_12, %c0_13], %39 {strides = array<i32>} : memref<8x8x128xf32, #tpu.memory_space<vmem>>, vector<1x8x128xf32>,
    %c1_i32 = arith.constant 1 : i32
    %40 = arith.index_cast %c1_i32 : i32 to index
    %c0_14 = arith.constant 0 : index
    %c0_15 = arith.constant 0 : index
    %41 = vector.load %arg1[%40, %c0_14, %c0_15] : memref<8x8x512xf32, #tpu.memory_space<vmem>>, vector<1x8x512xf32>
    %42 = vector.shape_cast %41 : vector<1x8x512xf32> to vector<8x512xf32>
    %cst_16 = arith.constant dense<0.000000e+00> : vector<8x512xf32>
    %43 = tpu.matmul %35, %3, %cst_16 {dimension_numbers = #tpu.dot_dimension_numbers<[1], [0], [0], [1], [0, 0, 1, 1], [], []>} : vector<8x128xf32>, vector<128x512xf32>, vector<8x512xf32> -> vector<8x512xf32>
    %44 = arith.addf %42, %43 : vector<8x512xf32>
    %45 = vector.extract_strided_slice %44 {offsets = [0, 0], sizes = [8, 128], strides = [1, 1]} : vector<8x512xf32> to vector<8x128xf32>
    %46 = arith.negf %45 : vector<8x128xf32>
    %47 = math.exp %46 : vector<8x128xf32>
    %cst_17 = arith.constant 1.000000e+00 : f32
    %48 = vector.broadcast %cst_17 : f32 to vector<8x128xf32>
    %49 = arith.addf %48, %47 : vector<8x128xf32>
    %50 = arith.divf %48, %49 : vector<8x128xf32>
    %51 = vector.extract_strided_slice %44 {offsets = [0, 128], sizes = [8, 128], strides = [1, 1]} : vector<8x512xf32> to vector<8x128xf32>
    %52 = arith.negf %51 : vector<8x128xf32>
    %53 = math.exp %52 : vector<8x128xf32>
    %cst_18 = arith.constant 1.000000e+00 : f32
    %54 = vector.broadcast %cst_18 : f32 to vector<8x128xf32>
    %55 = arith.addf %54, %53 : vector<8x128xf32>
    %56 = arith.divf %54, %55 : vector<8x128xf32>
    %57 = vector.extract_strided_slice %44 {offsets = [0, 256], sizes = [8, 128], strides = [1, 1]} : vector<8x512xf32> to vector<8x128xf32>
    %58 = math.tanh %57 : vector<8x128xf32>
    %59 = vector.extract_strided_slice %44 {offsets = [0, 384], sizes = [8, 128], strides = [1, 1]} : vector<8x512xf32> to vector<8x128xf32>
    %60 = arith.negf %59 : vector<8x128xf32>
    %61 = math.exp %60 : vector<8x128xf32>
    %cst_19 = arith.constant 1.000000e+00 : f32
    %62 = vector.broadcast %cst_19 : f32 to vector<8x128xf32>
    %63 = arith.addf %62, %61 : vector<8x128xf32>
    %64 = arith.divf %62, %63 : vector<8x128xf32>
    %65 = arith.mulf %56, %33 : vector<8x128xf32>
    %66 = arith.mulf %50, %58 : vector<8x128xf32>
    %67 = arith.addf %65, %66 : vector<8x128xf32>
    %68 = math.tanh %67 : vector<8x128xf32>
    %69 = arith.mulf %64, %68 : vector<8x128xf32>
    %70 = arith.index_cast %c1_i32 : i32 to index
    %c0_20 = arith.constant 0 : index
    %c0_21 = arith.constant 0 : index
    %71 = vector.load %arg3[%70, %c0_20, %c0_21] : memref<8x8x128xf32, #tpu.memory_space<vmem>>, vector<1x8x128xf32>
    %72 = vector.shape_cast %71 : vector<1x8x128xf32> to vector<8x128xf32>
    %73 = vector.shape_cast %69 : vector<8x128xf32> to vector<1x8x128xf32>
    tpu.vector_store %arg3[%70, %c0_20, %c0_21], %73 {strides = array<i32>} : memref<8x8x128xf32, #tpu.memory_space<vmem>>, vector<1x8x128xf32>,
    %c2_i32 = arith.constant 2 : i32
    %74 = arith.index_cast %c2_i32 : i32 to index
    %c0_22 = arith.constant 0 : index
    %c0_23 = arith.constant 0 : index
    %75 = vector.load %arg1[%74, %c0_22, %c0_23] : memref<8x8x512xf32, #tpu.memory_space<vmem>>, vector<1x8x512xf32>
    %76 = vector.shape_cast %75 : vector<1x8x512xf32> to vector<8x512xf32>
    %cst_24 = arith.constant dense<0.000000e+00> : vector<8x512xf32>
    %77 = tpu.matmul %69, %3, %cst_24 {dimension_numbers = #tpu.dot_dimension_numbers<[1], [0], [0], [1], [0, 0, 1, 1], [], []>} : vector<8x128xf32>, vector<128x512xf32>, vector<8x512xf32> -> vector<8x512xf32>
    %78 = arith.addf %76, %77 : vector<8x512xf32>
    %79 = vector.extract_strided_slice %78 {offsets = [0, 0], sizes = [8, 128], strides = [1, 1]} : vector<8x512xf32> to vector<8x128xf32>
    %80 = arith.negf %79 : vector<8x128xf32>
    %81 = math.exp %80 : vector<8x128xf32>
    %cst_25 = arith.constant 1.000000e+00 : f32
    %82 = vector.broadcast %cst_25 : f32 to vector<8x128xf32>
    %83 = arith.addf %82, %81 : vector<8x128xf32>
    %84 = arith.divf %82, %83 : vector<8x128xf32>
    %85 = vector.extract_strided_slice %78 {offsets = [0, 128], sizes = [8, 128], strides = [1, 1]} : vector<8x512xf32> to vector<8x128xf32>
    %86 = arith.negf %85 : vector<8x128xf32>
    %87 = math.exp %86 : vector<8x128xf32>
    %cst_26 = arith.constant 1.000000e+00 : f32
    %88 = vector.broadcast %cst_26 : f32 to vector<8x128xf32>
    %89 = arith.addf %88, %87 : vector<8x128xf32>
    %90 = arith.divf %88, %89 : vector<8x128xf32>
    %91 = vector.extract_strided_slice %78 {offsets = [0, 256], sizes = [8, 128], strides = [1, 1]} : vector<8x512xf32> to vector<8x128xf32>
    %92 = math.tanh %91 : vector<8x128xf32>
    %93 = vector.extract_strided_slice %78 {offsets = [0, 384], sizes = [8, 128], strides = [1, 1]} : vector<8x512xf32> to vector<8x128xf32>
    %94 = arith.negf %93 : vector<8x128xf32>
    %95 = math.exp %94 : vector<8x128xf32>
    %cst_27 = arith.constant 1.000000e+00 : f32
    %96 = vector.broadcast %cst_27 : f32 to vector<8x128xf32>
    %97 = arith.addf %96, %95 : vector<8x128xf32>
    %98 = arith.divf %96, %97 : vector<8x128xf32>
    %99 = arith.mulf %90, %67 : vector<8x128xf32>
    %100 = arith.mulf %84, %92 : vector<8x128xf32>
    %101 = arith.addf %99, %100 : vector<8x128xf32>
    %102 = math.tanh %101 : vector<8x128xf32>
    %103 = arith.mulf %98, %102 : vector<8x128xf32>
    %104 = arith.index_cast %c2_i32 : i32 to index
    %c0_28 = arith.constant 0 : index
    %c0_29 = arith.constant 0 : index
    %105 = vector.load %arg3[%104, %c0_28, %c0_29] : memref<8x8x128xf32, #tpu.memory_space<vmem>>, vector<1x8x128xf32>
    %106 = vector.shape_cast %105 : vector<1x8x128xf32> to vector<8x128xf32>
    %107 = vector.shape_cast %103 : vector<8x128xf32> to vector<1x8x128xf32>
    tpu.vector_store %arg3[%104, %c0_28, %c0_29], %107 {strides = array<i32>} : memref<8x8x128xf32, #tpu.memory_space<vmem>>, vector<1x8x128xf32>,
    %c3_i32 = arith.constant 3 : i32
    %108 = arith.index_cast %c3_i32 : i32 to index
    %c0_30 = arith.constant 0 : index
    %c0_31 = arith.constant 0 : index
    %109 = vector.load %arg1[%108, %c0_30, %c0_31] : memref<8x8x512xf32, #tpu.memory_space<vmem>>, vector<1x8x512xf32>
    %110 = vector.shape_cast %109 : vector<1x8x512xf32> to vector<8x512xf32>
    %cst_32 = arith.constant dense<0.000000e+00> : vector<8x512xf32>
    %111 = tpu.matmul %103, %3, %cst_32 {dimension_numbers = #tpu.dot_dimension_numbers<[1], [0], [0], [1], [0, 0, 1, 1], [], []>} : vector<8x128xf32>, vector<128x512xf32>, vector<8x512xf32> -> vector<8x512xf32>
    %112 = arith.addf %110, %111 : vector<8x512xf32>
    %113 = vector.extract_strided_slice %112 {offsets = [0, 0], sizes = [8, 128], strides = [1, 1]} : vector<8x512xf32> to vector<8x128xf32>
    %114 = arith.negf %113 : vector<8x128xf32>
    %115 = math.exp %114 : vector<8x128xf32>
    %cst_33 = arith.constant 1.000000e+00 : f32
    %116 = vector.broadcast %cst_33 : f32 to vector<8x128xf32>
    %117 = arith.addf %116, %115 : vector<8x128xf32>
    %118 = arith.divf %116, %117 : vector<8x128xf32>
    %119 = vector.extract_strided_slice %112 {offsets = [0, 128], sizes = [8, 128], strides = [1, 1]} : vector<8x512xf32> to vector<8x128xf32>
    %120 = arith.negf %119 : vector<8x128xf32>
    %121 = math.exp %120 : vector<8x128xf32>
    %cst_34 = arith.constant 1.000000e+00 : f32
    %122 = vector.broadcast %cst_34 : f32 to vector<8x128xf32>
    %123 = arith.addf %122, %121 : vector<8x128xf32>
    %124 = arith.divf %122, %123 : vector<8x128xf32>
    %125 = vector.extract_strided_slice %112 {offsets = [0, 256], sizes = [8, 128], strides = [1, 1]} : vector<8x512xf32> to vector<8x128xf32>
    %126 = math.tanh %125 : vector<8x128xf32>
    %127 = vector.extract_strided_slice %112 {offsets = [0, 384], sizes = [8, 128], strides = [1, 1]} : vector<8x512xf32> to vector<8x128xf32>
    %128 = arith.negf %127 : vector<8x128xf32>
    %129 = math.exp %128 : vector<8x128xf32>
    %cst_35 = arith.constant 1.000000e+00 : f32
    %130 = vector.broadcast %cst_35 : f32 to vector<8x128xf32>
    %131 = arith.addf %130, %129 : vector<8x128xf32>
    %132 = arith.divf %130, %131 : vector<8x128xf32>
    %133 = arith.mulf %124, %101 : vector<8x128xf32>
    %134 = arith.mulf %118, %126 : vector<8x128xf32>
    %135 = arith.addf %133, %134 : vector<8x128xf32>
    %136 = math.tanh %135 : vector<8x128xf32>
    %137 = arith.mulf %132, %136 : vector<8x128xf32>
    %138 = arith.index_cast %c3_i32 : i32 to index
    %c0_36 = arith.constant 0 : index
    %c0_37 = arith.constant 0 : index
    %139 = vector.load %arg3[%138, %c0_36, %c0_37] : memref<8x8x128xf32, #tpu.memory_space<vmem>>, vector<1x8x128xf32>
    %140 = vector.shape_cast %139 : vector<1x8x128xf32> to vector<8x128xf32>
    %141 = vector.shape_cast %137 : vector<8x128xf32> to vector<1x8x128xf32>
    tpu.vector_store %arg3[%138, %c0_36, %c0_37], %141 {strides = array<i32>} : memref<8x8x128xf32, #tpu.memory_space<vmem>>, vector<1x8x128xf32>,
    %c4_i32 = arith.constant 4 : i32
    %142 = arith.index_cast %c4_i32 : i32 to index
    %c0_38 = arith.constant 0 : index
    %c0_39 = arith.constant 0 : index
    %143 = vector.load %arg1[%142, %c0_38, %c0_39] : memref<8x8x512xf32, #tpu.memory_space<vmem>>, vector<1x8x512xf32>
    %144 = vector.shape_cast %143 : vector<1x8x512xf32> to vector<8x512xf32>
    %cst_40 = arith.constant dense<0.000000e+00> : vector<8x512xf32>
    %145 = tpu.matmul %137, %3, %cst_40 {dimension_numbers = #tpu.dot_dimension_numbers<[1], [0], [0], [1], [0, 0, 1, 1], [], []>} : vector<8x128xf32>, vector<128x512xf32>, vector<8x512xf32> -> vector<8x512xf32>
    %146 = arith.addf %144, %145 : vector<8x512xf32>
    %147 = vector.extract_strided_slice %146 {offsets = [0, 0], sizes = [8, 128], strides = [1, 1]} : vector<8x512xf32> to vector<8x128xf32>
    %148 = arith.negf %147 : vector<8x128xf32>
    %149 = math.exp %148 : vector<8x128xf32>
    %cst_41 = arith.constant 1.000000e+00 : f32
    %150 = vector.broadcast %cst_41 : f32 to vector<8x128xf32>
    %151 = arith.addf %150, %149 : vector<8x128xf32>
    %152 = arith.divf %150, %151 : vector<8x128xf32>
    %153 = vector.extract_strided_slice %146 {offsets = [0, 128], sizes = [8, 128], strides = [1, 1]} : vector<8x512xf32> to vector<8x128xf32>
    %154 = arith.negf %153 : vector<8x128xf32>
    %155 = math.exp %154 : vector<8x128xf32>
    %cst_42 = arith.constant 1.000000e+00 : f32
    %156 = vector.broadcast %cst_42 : f32 to vector<8x128xf32>
    %157 = arith.addf %156, %155 : vector<8x128xf32>
    %158 = arith.divf %156, %157 : vector<8x128xf32>
    %159 = vector.extract_strided_slice %146 {offsets = [0, 256], sizes = [8, 128], strides = [1, 1]} : vector<8x512xf32> to vector<8x128xf32>
    %160 = math.tanh %159 : vector<8x128xf32>
    %161 = vector.extract_strided_slice %146 {offsets = [0, 384], sizes = [8, 128], strides = [1, 1]} : vector<8x512xf32> to vector<8x128xf32>
    %162 = arith.negf %161 : vector<8x128xf32>
    %163 = math.exp %162 : vector<8x128xf32>
    %cst_43 = arith.constant 1.000000e+00 : f32
    %164 = vector.broadcast %cst_43 : f32 to vector<8x128xf32>
    %165 = arith.addf %164, %163 : vector<8x128xf32>
    %166 = arith.divf %164, %165 : vector<8x128xf32>
    %167 = arith.mulf %158, %135 : vector<8x128xf32>
    %168 = arith.mulf %152, %160 : vector<8x128xf32>
    %169 = arith.addf %167, %168 : vector<8x128xf32>
    %170 = math.tanh %169 : vector<8x128xf32>
    %171 = arith.mulf %166, %170 : vector<8x128xf32>
    %172 = arith.index_cast %c4_i32 : i32 to index
    %c0_44 = arith.constant 0 : index
    %c0_45 = arith.constant 0 : index
    %173 = vector.load %arg3[%172, %c0_44, %c0_45] : memref<8x8x128xf32, #tpu.memory_space<vmem>>, vector<1x8x128xf32>
    %174 = vector.shape_cast %173 : vector<1x8x128xf32> to vector<8x128xf32>
    %175 = vector.shape_cast %171 : vector<8x128xf32> to vector<1x8x128xf32>
    tpu.vector_store %arg3[%172, %c0_44, %c0_45], %175 {strides = array<i32>} : memref<8x8x128xf32, #tpu.memory_space<vmem>>, vector<1x8x128xf32>,
    %c5_i32 = arith.constant 5 : i32
    %176 = arith.index_cast %c5_i32 : i32 to index
    %c0_46 = arith.constant 0 : index
    %c0_47 = arith.constant 0 : index
    %177 = vector.load %arg1[%176, %c0_46, %c0_47] : memref<8x8x512xf32, #tpu.memory_space<vmem>>, vector<1x8x512xf32>
    %178 = vector.shape_cast %177 : vector<1x8x512xf32> to vector<8x512xf32>
    %cst_48 = arith.constant dense<0.000000e+00> : vector<8x512xf32>
    %179 = tpu.matmul %171, %3, %cst_48 {dimension_numbers = #tpu.dot_dimension_numbers<[1], [0], [0], [1], [0, 0, 1, 1], [], []>} : vector<8x128xf32>, vector<128x512xf32>, vector<8x512xf32> -> vector<8x512xf32>
    %180 = arith.addf %178, %179 : vector<8x512xf32>
    %181 = vector.extract_strided_slice %180 {offsets = [0, 0], sizes = [8, 128], strides = [1, 1]} : vector<8x512xf32> to vector<8x128xf32>
    %182 = arith.negf %181 : vector<8x128xf32>
    %183 = math.exp %182 : vector<8x128xf32>
    %cst_49 = arith.constant 1.000000e+00 : f32
    %184 = vector.broadcast %cst_49 : f32 to vector<8x128xf32>
    %185 = arith.addf %184, %183 : vector<8x128xf32>
    %186 = arith.divf %184, %185 : vector<8x128xf32>
    %187 = vector.extract_strided_slice %180 {offsets = [0, 128], sizes = [8, 128], strides = [1, 1]} : vector<8x512xf32> to vector<8x128xf32>
    %188 = arith.negf %187 : vector<8x128xf32>
    %189 = math.exp %188 : vector<8x128xf32>
    %cst_50 = arith.constant 1.000000e+00 : f32
    %190 = vector.broadcast %cst_50 : f32 to vector<8x128xf32>
    %191 = arith.addf %190, %189 : vector<8x128xf32>
    %192 = arith.divf %190, %191 : vector<8x128xf32>
    %193 = vector.extract_strided_slice %180 {offsets = [0, 256], sizes = [8, 128], strides = [1, 1]} : vector<8x512xf32> to vector<8x128xf32>
    %194 = math.tanh %193 : vector<8x128xf32>
    %195 = vector.extract_strided_slice %180 {offsets = [0, 384], sizes = [8, 128], strides = [1, 1]} : vector<8x512xf32> to vector<8x128xf32>
    %196 = arith.negf %195 : vector<8x128xf32>
    %197 = math.exp %196 : vector<8x128xf32>
    %cst_51 = arith.constant 1.000000e+00 : f32
    %198 = vector.broadcast %cst_51 : f32 to vector<8x128xf32>
    %199 = arith.addf %198, %197 : vector<8x128xf32>
    %200 = arith.divf %198, %199 : vector<8x128xf32>
    %201 = arith.mulf %192, %169 : vector<8x128xf32>
    %202 = arith.mulf %186, %194 : vector<8x128xf32>
    %203 = arith.addf %201, %202 : vector<8x128xf32>
    %204 = math.tanh %203 : vector<8x128xf32>
    %205 = arith.mulf %200, %204 : vector<8x128xf32>
    %206 = arith.index_cast %c5_i32 : i32 to index
    %c0_52 = arith.constant 0 : index
    %c0_53 = arith.constant 0 : index
    %207 = vector.load %arg3[%206, %c0_52, %c0_53] : memref<8x8x128xf32, #tpu.memory_space<vmem>>, vector<1x8x128xf32>
    %208 = vector.shape_cast %207 : vector<1x8x128xf32> to vector<8x128xf32>
    %209 = vector.shape_cast %205 : vector<8x128xf32> to vector<1x8x128xf32>
    tpu.vector_store %arg3[%206, %c0_52, %c0_53], %209 {strides = array<i32>} : memref<8x8x128xf32, #tpu.memory_space<vmem>>, vector<1x8x128xf32>,
    %c6_i32 = arith.constant 6 : i32
    %210 = arith.index_cast %c6_i32 : i32 to index
    %c0_54 = arith.constant 0 : index
    %c0_55 = arith.constant 0 : index
    %211 = vector.load %arg1[%210, %c0_54, %c0_55] : memref<8x8x512xf32, #tpu.memory_space<vmem>>, vector<1x8x512xf32>
    %212 = vector.shape_cast %211 : vector<1x8x512xf32> to vector<8x512xf32>
    %cst_56 = arith.constant dense<0.000000e+00> : vector<8x512xf32>
    %213 = tpu.matmul %205, %3, %cst_56 {dimension_numbers = #tpu.dot_dimension_numbers<[1], [0], [0], [1], [0, 0, 1, 1], [], []>} : vector<8x128xf32>, vector<128x512xf32>, vector<8x512xf32> -> vector<8x512xf32>
    %214 = arith.addf %212, %213 : vector<8x512xf32>
    %215 = vector.extract_strided_slice %214 {offsets = [0, 0], sizes = [8, 128], strides = [1, 1]} : vector<8x512xf32> to vector<8x128xf32>
    %216 = arith.negf %215 : vector<8x128xf32>
    %217 = math.exp %216 : vector<8x128xf32>
    %cst_57 = arith.constant 1.000000e+00 : f32
    %218 = vector.broadcast %cst_57 : f32 to vector<8x128xf32>
    %219 = arith.addf %218, %217 : vector<8x128xf32>
    %220 = arith.divf %218, %219 : vector<8x128xf32>
    %221 = vector.extract_strided_slice %214 {offsets = [0, 128], sizes = [8, 128], strides = [1, 1]} : vector<8x512xf32> to vector<8x128xf32>
    %222 = arith.negf %221 : vector<8x128xf32>
    %223 = math.exp %222 : vector<8x128xf32>
    %cst_58 = arith.constant 1.000000e+00 : f32
    %224 = vector.broadcast %cst_58 : f32 to vector<8x128xf32>
    %225 = arith.addf %224, %223 : vector<8x128xf32>
    %226 = arith.divf %224, %225 : vector<8x128xf32>
    %227 = vector.extract_strided_slice %214 {offsets = [0, 256], sizes = [8, 128], strides = [1, 1]} : vector<8x512xf32> to vector<8x128xf32>
    %228 = math.tanh %227 : vector<8x128xf32>
    %229 = vector.extract_strided_slice %214 {offsets = [0, 384], sizes = [8, 128], strides = [1, 1]} : vector<8x512xf32> to vector<8x128xf32>
    %230 = arith.negf %229 : vector<8x128xf32>
    %231 = math.exp %230 : vector<8x128xf32>
    %cst_59 = arith.constant 1.000000e+00 : f32
    %232 = vector.broadcast %cst_59 : f32 to vector<8x128xf32>
    %233 = arith.addf %232, %231 : vector<8x128xf32>
    %234 = arith.divf %232, %233 : vector<8x128xf32>
    %235 = arith.mulf %226, %203 : vector<8x128xf32>
    %236 = arith.mulf %220, %228 : vector<8x128xf32>
    %237 = arith.addf %235, %236 : vector<8x128xf32>
    %238 = math.tanh %237 : vector<8x128xf32>
    %239 = arith.mulf %234, %238 : vector<8x128xf32>
    %240 = arith.index_cast %c6_i32 : i32 to index
    %c0_60 = arith.constant 0 : index
    %c0_61 = arith.constant 0 : index
    %241 = vector.load %arg3[%240, %c0_60, %c0_61] : memref<8x8x128xf32, #tpu.memory_space<vmem>>, vector<1x8x128xf32>
    %242 = vector.shape_cast %241 : vector<1x8x128xf32> to vector<8x128xf32>
    %243 = vector.shape_cast %239 : vector<8x128xf32> to vector<1x8x128xf32>
    tpu.vector_store %arg3[%240, %c0_60, %c0_61], %243 {strides = array<i32>} : memref<8x8x128xf32, #tpu.memory_space<vmem>>, vector<1x8x128xf32>,
    %c7_i32 = arith.constant 7 : i32
    %244 = arith.index_cast %c7_i32 : i32 to index
    %c0_62 = arith.constant 0 : index
    %c0_63 = arith.constant 0 : index
    %245 = vector.load %arg1[%244, %c0_62, %c0_63] : memref<8x8x512xf32, #tpu.memory_space<vmem>>, vector<1x8x512xf32>
    %246 = vector.shape_cast %245 : vector<1x8x512xf32> to vector<8x512xf32>
    %cst_64 = arith.constant dense<0.000000e+00> : vector<8x512xf32>
    %247 = tpu.matmul %239, %3, %cst_64 {dimension_numbers = #tpu.dot_dimension_numbers<[1], [0], [0], [1], [0, 0, 1, 1], [], []>} : vector<8x128xf32>, vector<128x512xf32>, vector<8x512xf32> -> vector<8x512xf32>
    %248 = arith.addf %246, %247 : vector<8x512xf32>
    %249 = vector.extract_strided_slice %248 {offsets = [0, 0], sizes = [8, 128], strides = [1, 1]} : vector<8x512xf32> to vector<8x128xf32>
    %250 = arith.negf %249 : vector<8x128xf32>
    %251 = math.exp %250 : vector<8x128xf32>
    %cst_65 = arith.constant 1.000000e+00 : f32
    %252 = vector.broadcast %cst_65 : f32 to vector<8x128xf32>
    %253 = arith.addf %252, %251 : vector<8x128xf32>
    %254 = arith.divf %252, %253 : vector<8x128xf32>
    %255 = vector.extract_strided_slice %248 {offsets = [0, 128], sizes = [8, 128], strides = [1, 1]} : vector<8x512xf32> to vector<8x128xf32>
    %256 = arith.negf %255 : vector<8x128xf32>
    %257 = math.exp %256 : vector<8x128xf32>
    %cst_66 = arith.constant 1.000000e+00 : f32
    %258 = vector.broadcast %cst_66 : f32 to vector<8x128xf32>
    %259 = arith.addf %258, %257 : vector<8x128xf32>
    %260 = arith.divf %258, %259 : vector<8x128xf32>
    %261 = vector.extract_strided_slice %248 {offsets = [0, 256], sizes = [8, 128], strides = [1, 1]} : vector<8x512xf32> to vector<8x128xf32>
    %262 = math.tanh %261 : vector<8x128xf32>
    %263 = vector.extract_strided_slice %248 {offsets = [0, 384], sizes = [8, 128], strides = [1, 1]} : vector<8x512xf32> to vector<8x128xf32>
    %264 = arith.negf %263 : vector<8x128xf32>
    %265 = math.exp %264 : vector<8x128xf32>
    %cst_67 = arith.constant 1.000000e+00 : f32
    %266 = vector.broadcast %cst_67 : f32 to vector<8x128xf32>
    %267 = arith.addf %266, %265 : vector<8x128xf32>
    %268 = arith.divf %266, %267 : vector<8x128xf32>
    %269 = arith.mulf %260, %237 : vector<8x128xf32>
    %270 = arith.mulf %254, %262 : vector<8x128xf32>
    %271 = arith.addf %269, %270 : vector<8x128xf32>
    %272 = math.tanh %271 : vector<8x128xf32>
    %273 = arith.mulf %268, %272 : vector<8x128xf32>
    %274 = arith.index_cast %c7_i32 : i32 to index
    %c0_68 = arith.constant 0 : index
    %c0_69 = arith.constant 0 : index
    %275 = vector.load %arg3[%274, %c0_68, %c0_69] : memref<8x8x128xf32, #tpu.memory_space<vmem>>, vector<1x8x128xf32>
    %276 = vector.shape_cast %275 : vector<1x8x128xf32> to vector<8x128xf32>
    %277 = vector.shape_cast %273 : vector<8x128xf32> to vector<1x8x128xf32>
    tpu.vector_store %arg3[%274, %c0_68, %c0_69], %277 {strides = array<i32>} : memref<8x8x128xf32, #tpu.memory_space<vmem>>, vector<1x8x128xf32>,
    %c8_i32 = arith.constant 8 : i32
    %c0_70 = arith.constant 0 : index
    %c0_71 = arith.constant 0 : index
    %278 = vector.load %arg6[%c0_70, %c0_71] : memref<8x128xf32, #tpu.memory_space<vmem>>, vector<8x128xf32>
    tpu.vector_store %arg6[%c0_70, %c0_71], %273 {strides = array<i32>} : memref<8x128xf32, #tpu.memory_space<vmem>>, vector<8x128xf32>,
    %c0_72 = arith.constant 0 : index
    %c0_73 = arith.constant 0 : index
    %279 = vector.load %arg7[%c0_72, %c0_73] : memref<8x128xf32, #tpu.memory_space<vmem>>, vector<8x128xf32>
    tpu.vector_store %arg7[%c0_72, %c0_73], %271 {strides = array<i32>} : memref<8x128xf32, #tpu.memory_space<vmem>>, vector<8x128xf32>,
    %c0_i32_74 = arith.constant 0 : i32
    %280 = arith.cmpi eq, %arg0, %c0_i32_74 : i32
    %281 = arith.extui %280 : i1 to i32
    %c0_i32_75 = arith.constant 0 : i32
    %282 = arith.cmpi ne, %281, %c0_i32_75 : i32
    scf.if %282 {
      %c0_76 = arith.constant 0 : index
      %c0_77 = arith.constant 0 : index
      %283 = vector.load %arg4[%c0_76, %c0_77] : memref<8x128xf32, #tpu.memory_space<vmem>>, vector<8x128xf32>
      tpu.vector_store %arg4[%c0_76, %c0_77], %273 {strides = array<i32>} : memref<8x128xf32, #tpu.memory_space<vmem>>, vector<8x128xf32>,
      %c0_78 = arith.constant 0 : index
      %c0_79 = arith.constant 0 : index
      %284 = vector.load %arg5[%c0_78, %c0_79] : memref<8x128xf32, #tpu.memory_space<vmem>>, vector<8x128xf32>
      tpu.vector_store %arg5[%c0_78, %c0_79], %271 {strides = array<i32>} : memref<8x128xf32, #tpu.memory_space<vmem>>, vector<8x128xf32>,
    } else {
    }
    return
  }
  func.func @transform_0(%arg0: i32) -> (i32, i32, i32) {
    %c0_i32 = arith.constant 0 : i32
    %c0_i32_0 = arith.constant 0 : i32
    %c0_i32_1 = arith.constant 0 : i32
    return %arg0, %c0_i32, %c0_i32_0 : i32, i32, i32
  }
  func.func @transform_1(%arg0: i32) -> (i32, i32) {
    %c0_i32 = arith.constant 0 : i32
    %c0_i32_0 = arith.constant 0 : i32
    %c0_i32_1 = arith.constant 0 : i32
    return %c0_i32, %c0_i32_0 : i32, i32
  }
  func.func @transform_2(%arg0: i32) -> (i32, i32, i32) {
    %c0_i32 = arith.constant 0 : i32
    %c0_i32_0 = arith.constant 0 : i32
    %c0_i32_1 = arith.constant 0 : i32
    return %arg0, %c0_i32, %c0_i32_0 : i32, i32, i32
  }
  func.func @transform_3(%arg0: i32) -> (i32, i32) {
    %c0_i32 = arith.constant 0 : i32
    %c0_i32_0 = arith.constant 0 : i32
    %c0_i32_1 = arith.constant 0 : i32
    return %c0_i32, %c0_i32_0 : i32, i32
  }
  func.func @transform_4(%arg0: i32) -> (i32, i32) {
    %c0_i32 = arith.constant 0 : i32
    %c0_i32_0 = arith.constant 0 : i32
    %c0_i32_1 = arith.constant 0 : i32
    return %c0_i32, %c0_i32_0 : i32, i32
  }
}

</mosaic_0001>

<bundles_post_ra>
// kernel: tpu_custom_call.1
= control target key start
LH: loop header
LB: loop body
LE: loop exit
PB: predicated region body
PF: predicated region fallthrough
CT: control target
= control target key end

     0   :  { %10 = vsyncpa [#allocation5], 0  ;;  %s2776_s0 = inlined_call_operand.hbm [shape: f32[8,8,512], index: 0, kind: input, shape index: {}]   ;;  %s2777_s1 = inlined_call_operand.hbm [shape: f32[128,512], index: 1, kind: input, shape index: {}]   ;;  %s2778_s2 = inlined_call_operand.hbm [shape: f32[8,8,128], index: 2, kind: output, shape index: {0}]   ;;  %s2779_s3 = inlined_call_operand.hbm [shape: f32[8,128], index: 3, kind: output, shape index: {1}]   ;;  %s2780_s4 = inlined_call_operand.hbm [shape: f32[8,128], index: 4, kind: output, shape index: {2}]  }
   0x1   :  { %11 = vsyncpa [#allocation8], 0 }
   0x2   :  { %12 = vsyncpa [#allocation6], 0 }
   0x3   :  { %13 = vsyncpa [#allocation11], 0  ;;  %s1916_s15 = smov [#allocation4]  }
   0x4   :  { %s19_s16 = sshll.u32 %s1916_s15, 4  ;;  %s20_s16 = int_to_ptr.vmem [resolvable:$true] %s19_s16 }
   0x5   :  { %s1816_s17 = scalar_lea.vmem %s20_s16, 4096  ;;  %p1821_p1 = scmp.lt.s32.totalorder %s20_s16, %s20_s16 }
   0x6   :  { %p1817_p0 = scmp.ne.s32.totalorder %s20_s16, %s1816_s17  ;;  %p1822_p2 = scmp.lt.s32.totalorder %s1816_s17, %s1816_s17 }
   0x8   :  { %p1823_p3 = por %p1822_p2, %p1821_p1 }
   0xa   :  { %p1824_p4 = pnand %p1823_p3, %p1817_p0 }
   0xc   :  { %1827 = shalt.err (!%p1824_p4)
}
   0xd   :  { %s1917_s18 = smov 512   ;;  %s1918_s19 = smov 32  }
   0xe   :  { %25 = dma.hbm_to_vmem [thread:$0]  %s2776_s0, 4096, %s20_s16, [#allocation5], %s1917_s18, %s1917_s18, %s1918_s19  }
   0xf   :  { %s1919_s22 = smov [#allocation7]  }
  0x10   :  { %s31_s23 = sshll.u32 %s1919_s22, 4  ;;  %s32_s23 = int_to_ptr.vmem [resolvable:$true] %s31_s23 }
  0x11   :  { %s1836_s24 = scalar_lea.vmem %s32_s23, 8192  ;;  %p1841_p6 = scmp.lt.s32.totalorder %s32_s23, %s32_s23 }
  0x12   :  { %p1837_p5 = scmp.ne.s32.totalorder %s32_s23, %s1836_s24  ;;  %p1842_p7 = scmp.lt.s32.totalorder %s1836_s24, %s1836_s24 }
  0x14   :  { %p1843_p8 = por %p1842_p7, %p1841_p6 }
  0x16   :  { %p1844_p9 = pnand %p1843_p8, %p1837_p5 }
  0x18   :  { %1847 = shalt.err (!%p1844_p9)
}
  0x19   :  { %37 = dma.hbm_to_vmem [thread:$0]  %s2777_s1, 8192, %s32_s23, [#allocation8], %s1917_s18, %s1917_s18, %s1918_s19  }
  0x1a   :  { %1908 = dma.done.wait [#allocation5], 4096  }
  0x1b   :  { %1909 = vsyncadd [#allocation5], 4294963200 }
  0x1c   :  { %1910 = dma.done.wait [#allocation8], 8192  }
  0x1d   :  { %1911 = vsyncadd [#allocation8], 4294959104  ;;  %v2783_v0 = vmov 0.0   ;;  %v1959_v1 = vld [vmem:[#allocation7 + $0x1e8] sm:$0xff]  ;;  %v1961_v2 = vld [vmem:[#allocation7 + $0x1e0] sm:$0xff]  ;;  %s1921_s0 = smov [#allocation10]  }
  0x1e   :  { %184 = vmatprep.mubr.f32.mxu0 %v2783_v0  ;;  %255 = vmatprep.mubr.f32.mxu1 %v2783_v0  ;;  %2854 = vst [vmem:[#allocation17_spill] sm:$0xff] %v1959_v1  ;;  %v1963_v3 = vld [vmem:[#allocation7 + $0x1c8] sm:$0xff]  ;;  %v1966_v4 = vld [vmem:[#allocation7 + $0x1c0] sm:$0xff]  ;;  %v1980_v9 = vld [vmem:[#allocation7 + $0x1f8] sm:$0xff]  ;;  %s1555_s1 = sshll.u32 %s1921_s0, 4  ;;  %s1922_s27 = smov [#allocation9]   ;;  %s1556_s1 = int_to_ptr.vmem [resolvable:$true] %s1555_s1 }
  0x1f   :  { %120 = vmatprep.subr.mxu0 %v1959_v1  ;;  %v1969_v5 = vld [vmem:[#allocation7 + $0x1a8] sm:$0xff]  ;;  %v1972_v6 = vld [vmem:[#allocation7 + $0x1a0] sm:$0xff]  ;;  %2855 = vst [vmem:[#allocation18_spill] sm:$0xff] %v1980_v9  ;;  %191 = vmatprep.subr.mxu1 %v1980_v9  ;;  %v1986_v11 = vld [vmem:[#allocation7 + $0x1f0] sm:$0xff]  ;;  %s1542_s28 = sshll.u32 %s1922_s27, 4  ;;  %s1923_s29 = smov [#allocation12]   ;;  %s1543_s28 = int_to_ptr.vmem [resolvable:$true] %s1542_s28 }
  0x20   :  { %121 = vmatpush1.msra.mxu0 %v1961_v2  ;;  %v1975_v7 = vld [vmem:[#allocation7 + $0x188] sm:$0xff]  ;;  %v1978_v8 = vld [vmem:[#allocation7 + $0x180] sm:$0xff]  ;;  %192 = vmatpush1.msra.mxu1 %v1986_v11  ;;  %v1992_v13 = vld [vmem:[#allocation7 + $0x1d8] sm:$0xff]  ;;  %s1565_s30 = sshll.u32 %s1923_s29, 4  ;;  %s1848_s5 = scalar_lea.vmem %s1556_s1, 128  ;;  %s1566_s30 = int_to_ptr.vmem [resolvable:$true] %s1565_s30 }
  0x21   :  { %122 = vmatprep.subr.mxu0 %v1963_v3  ;;  %v1983_v10 = vld [vmem:[#allocation7 + $0x168] sm:$0xff]  ;;  %v1989_v12 = vld [vmem:[#allocation7 + $0x160] sm:$0xff]  ;;  %v1994_v14 = vld [vmem:[#allocation7 + $0x1d0] sm:$0xff]  ;;  %193 = vmatprep.subr.mxu1 %v1992_v13  ;;  %p1849_p10 = scmp.ne.s32.totalorder %s1556_s1, %s1848_s5  ;;  %p1853_p11 = scmp.lt.s32.totalorder %s1556_s1, %s1556_s1 }
  0x22   :  { %123 = vmatpush1.msra.mxu0 %v1966_v4  ;;  %v1997_v15 = vld [vmem:[#allocation7 + $0x148] sm:$0xff]  ;;  %v2000_v16 = vld [vmem:[#allocation7 + $0x1b8] sm:$0xff]  ;;  %v2003_v17 = vld [vmem:[#allocation7 + $0x140] sm:$0xff]  ;;  %194 = vmatpush1.msra.mxu1 %v1994_v14  ;;  %p1854_p12 = scmp.lt.s32.totalorder %s1848_s5, %s1848_s5 }
  0x23   :  { %124 = vmatprep.subr.mxu0 %v1969_v5  ;;  %v2006_v18 = vld [vmem:[#allocation7 + $0x1b0] sm:$0xff]  ;;  %v2008_v19 = vld [vmem:[#allocation7 + $0x198] sm:$0xff]  ;;  %v2011_v20 = vld [vmem:[#allocation7 + $0x128] sm:$0xff]  ;;  %195 = vmatprep.subr.mxu1 %v2000_v16 }
  0x24   :  { %125 = vmatpush1.msra.mxu0 %v1972_v6  ;;  %v2014_v21 = vld [vmem:[#allocation7 + $0x190] sm:$0xff]  ;;  %v2017_v22 = vld [vmem:[#allocation7 + $0x120] sm:$0xff]  ;;  %196 = vmatpush1.msra.mxu1 %v2006_v18  ;;  %v2020_v23 = vld [vmem:[#allocation7 + $0x178] sm:$0xff]  ;;  %p1855_p13 = por %p1854_p12, %p1853_p11 }
  0x25   :  { %126 = vmatprep.subr.mxu0 %v1975_v7  ;;  %v2023_v24 = vld [vmem:[#allocation7 + $0x108] sm:$0xff]  ;;  %197 = vmatprep.subr.mxu1 %v2008_v19  ;;  %v2026_v25 = vld [vmem:[#allocation7 + $0x170] sm:$0xff]  ;;  %v2029_v26 = vld [vmem:[#allocation7 + $0x100] sm:$0xff] }
  0x26   :  { %127 = vmatpush1.msra.mxu0 %v1978_v8  ;;  %198 = vmatpush1.msra.mxu1 %v2014_v21  ;;  %v2032_v27 = vld [vmem:[#allocation7 + $0x158] sm:$0xff]  ;;  %v2035_v28 = vld [vmem:[#allocation7 + $0xe8] sm:$0xff]  ;;  %v2038_v29 = vld [vmem:[#allocation7 + $0x150] sm:$0xff]  ;;  %p1856_p0 = pnand %p1855_p13, %p1849_p10 }
  0x27   :  { %128 = vmatprep.subr.mxu0 %v1983_v10  ;;  %199 = vmatprep.subr.mxu1 %v2020_v23  ;;  %v2041_v30 = vld [vmem:[#allocation7 + $0xe0] sm:$0xff]  ;;  %v2044_v31 = vld [vmem:[#allocation7 + $0x138] sm:$0xff]  ;;  %v2047_v32 = vld [vmem:[#allocation7 + $0xc8] sm:$0xff] }
  0x28   :  { %129 = vmatpush1.msra.mxu0 %v1989_v12  ;;  %200 = vmatpush1.msra.mxu1 %v2026_v25  ;;  %v2050_v33 = vld [vmem:[#allocation7 + $0x130] sm:$0xff]  ;;  %v2053_v34 = vld [vmem:[#allocation7 + $0xc0] sm:$0xff]  ;;  %v2056_v35 = vld [vmem:[#allocation7 + $0x118] sm:$0xff] }
  0x29   :  { %130 = vmatprep.subr.mxu0 %v1997_v15  ;;  %201 = vmatprep.subr.mxu1 %v2032_v27  ;;  %v2059_v36 = vld [vmem:[#allocation7 + $0xa8] sm:$0xff]  ;;  %v2062_v37 = vld [vmem:[#allocation7 + $0x110] sm:$0xff]  ;;  %v2065_v38 = vld [vmem:[#allocation7 + $0xa0] sm:$0xff] }
  0x2a   :  { %131 = vmatpush1.msra.mxu0 %v2003_v17  ;;  %202 = vmatpush1.msra.mxu1 %v2038_v29  ;;  %v2068_v39 = vld [vmem:[#allocation7 + $0xf8] sm:$0xff]  ;;  %v2071_v40 = vld [vmem:[#allocation7 + $0x88] sm:$0xff]  ;;  %v2074_v41 = vld [vmem:[#allocation7 + $0xf0] sm:$0xff] }
  0x2b   :  { %132 = vmatprep.subr.mxu0 %v2011_v20  ;;  %203 = vmatprep.subr.mxu1 %v2044_v31  ;;  %v2077_v42 = vld [vmem:[#allocation7 + $0x80] sm:$0xff]  ;;  %v2080_v43 = vld [vmem:[#allocation7 + $0xd8] sm:$0xff]  ;;  %v2083_v44 = vld [vmem:[#allocation7 + $0x68] sm:$0xff] }
  0x2c   :  { %133 = vmatpush1.msra.mxu0 %v2017_v22  ;;  %204 = vmatpush1.msra.mxu1 %v2050_v33  ;;  %2856 = vst [vmem:[#allocation19_spill] sm:$0xff] %v2077_v42  ;;  %2857 = vst [vmem:[#allocation20_spill] sm:$0xff] %v2083_v44  ;;  %v2086_v45 = vld [vmem:[#allocation7 + $0xd0] sm:$0xff]  ;;  %v2089_v46 = vld [vmem:[#allocation7 + $0x60] sm:$0xff] }
  0x2d   :  { %134 = vmatprep.subr.mxu0 %v2023_v24  ;;  %205 = vmatprep.subr.mxu1 %v2056_v35  ;;  %2858 = vst [vmem:[#allocation21_spill] sm:$0xff] %v2089_v46  ;;  %v2092_v47 = vld [vmem:[#allocation7 + $0xb8] sm:$0xff]  ;;  %v2095_v48 = vld [vmem:[#allocation7 + $0x48] sm:$0xff]  ;;  %v2098_v49 = vld [vmem:[#allocation7 + $0xb0] sm:$0xff] }
  0x2e   :  { %135 = vmatpush1.msra.mxu0 %v2029_v26  ;;  %206 = vmatpush1.msra.mxu1 %v2062_v37  ;;  %2859 = vst [vmem:[#allocation22_spill] sm:$0xff] %v2095_v48  ;;  %v2101_v50 = vld [vmem:[#allocation7 + $0x40] sm:$0xff]  ;;  %v2104_v51 = vld [vmem:[#allocation7 + $0x98] sm:$0xff]  ;;  %v2107_v52 = vld [vmem:[#allocation7 + $0x28] sm:$0xff] }
  0x2f   :  { %136 = vmatprep.subr.mxu0 %v2035_v28  ;;  %207 = vmatprep.subr.mxu1 %v2068_v39  ;;  %2860 = vst [vmem:[#allocation23_spill] sm:$0xff] %v2101_v50  ;;  %2861 = vst [vmem:[#allocation24_spill] sm:$0xff] %v2107_v52  ;;  %v2110_v53 = vld [vmem:[#allocation7 + $0x90] sm:$0xff]  ;;  %v2113_v54 = vld [vmem:[#allocation7 + $0x20] sm:$0xff] }
  0x30   :  { %137 = vmatpush1.msra.mxu0 %v2041_v30  ;;  %208 = vmatpush1.msra.mxu1 %v2074_v41  ;;  %2862 = vst [vmem:[#allocation25_spill] sm:$0xff] %v2110_v53  ;;  %2863 = vst [vmem:[#allocation26_spill] sm:$0xff] %v2113_v54  ;;  %v2116_v55 = vld [vmem:[#allocation7 + $0x78] sm:$0xff]  ;;  %v2119_v56 = vld [vmem:[#allocation7 + $0x8] sm:$0xff] }
  0x31   :  { %138 = vmatprep.subr.mxu0 %v2047_v32  ;;  %209 = vmatprep.subr.mxu1 %v2080_v43  ;;  %2864 = vst [vmem:[#allocation27_spill] sm:$0xff] %v2116_v55  ;;  %2865 = vst [vmem:[#allocation28_spill] sm:$0xff] %v2119_v56  ;;  %v2122_v57 = vld [vmem:[#allocation7 + $0x70] sm:$0xff]  ;;  %v2125_v58 = vld [vmem:[#allocation7] sm:$0xff] }
  0x32   :  { %139 = vmatpush1.msra.mxu0 %v2053_v34  ;;  %210 = vmatpush1.msra.mxu1 %v2086_v45  ;;  %2866 = vst [vmem:[#allocation29_spill] sm:$0xff] %v2122_v57  ;;  %2867 = vst [vmem:[#allocation30_spill] sm:$0xff] %v2125_v58  ;;  %v2128_v59 = vld [vmem:[#allocation7 + $0x58] sm:$0xff]  ;;  %v2132_v60 = vld [vmem:[#allocation7 + $0x50] sm:$0xff] }
  0x33   :  { %140 = vmatprep.subr.mxu0 %v2059_v36  ;;  %211 = vmatprep.subr.mxu1 %v2092_v47  ;;  %2868 = vst [vmem:[#allocation31_spill] sm:$0xff] %v2128_v59  ;;  %2869 = vst [vmem:[#allocation32_spill] sm:$0xff] %v2132_v60  ;;  %v2136_v61 = vld [vmem:[#allocation7 + $0x38] sm:$0xff]  ;;  %v2140_v62 = vld [vmem:[#allocation7 + $0x30] sm:$0xff] }
  0x34   :  { %141 = vmatpush1.msra.mxu0 %v2065_v38  ;;  %212 = vmatpush1.msra.mxu1 %v2098_v49  ;;  %2870 = vst [vmem:[#allocation33_spill] sm:$0xff] %v2136_v61  ;;  %2871 = vst [vmem:[#allocation34_spill] sm:$0xff] %v2140_v62  ;;  %v2144_v63 = vld [vmem:[#allocation7 + $0x18] sm:$0xff] }
  0x35   :  { %142 = vmatprep.subr.mxu0 %v2071_v40  ;;  %213 = vmatprep.subr.mxu1 %v2104_v51  ;;  %2872 = vst [vmem:[#allocation35_spill] sm:$0xff] %v2144_v63 }
  0x36   :  { %143 = vmatpush1.msra.mxu0 %v2077_v42  ;;  %214 = vmatpush1.msra.mxu1 %v2110_v53 }
  0x37   :  { %144 = vmatprep.subr.mxu0 %v2083_v44  ;;  %215 = vmatprep.subr.mxu1 %v2116_v55 }
  0x38   :  { %145 = vmatpush1.msra.mxu0 %v2089_v46  ;;  %216 = vmatpush1.msra.mxu1 %v2122_v57 }
  0x39   :  { %146 = vmatprep.subr.mxu0 %v2095_v48  ;;  %217 = vmatprep.subr.mxu1 %v2128_v59 }
  0x3a   :  { %147 = vmatpush1.msra.mxu0 %v2101_v50  ;;  %218 = vmatpush1.msra.mxu1 %v2132_v60 }
  0x3b   :  { %148 = vmatprep.subr.mxu0 %v2107_v52  ;;  %219 = vmatprep.subr.mxu1 %v2136_v61 }
  0x3c   :  { %149 = vmatpush1.msra.mxu0 %v2113_v54  ;;  %v2147_v54 = vld [vmem:[#allocation7 + $0x10] sm:$0xff]  ;;  %220 = vmatpush1.msra.mxu1 %v2140_v62 }
  0x3d   :  { %150 = vmatprep.subr.mxu0 %v2119_v56  ;;  %2873 = vst [vmem:[#allocation36_spill] sm:$0xff] %v2147_v54  ;;  %221 = vmatprep.subr.mxu1 %v2144_v63 }
  0x3e   :  { %151 = vmatpush1.msra.mxu0 %v2125_v58  ;;  %222 = vmatpush1.msra.mxu1 %v2147_v54 }
  0x3f   :  { %185 = vmatmul.mubr.f32.vlgmr.msra.gmra.mxu0 %v2783_v0  ;;  %296 = vmatprep.subr.mxu0 %v1959_v1 }
  0x40   :  { %297 = vmatpush1.msra.mxu0 %v1961_v2  ;;  %256 = vmatmul.mubr.f32.vlgmr.msra.gmra.mxu1 %v2783_v0  ;;  %v2874_v0 = vld [vmem:[#allocation26_spill] sm:$0xff] }
  0x41   :  { %298 = vmatprep.subr.mxu0 %v1963_v3  ;;  %367 = vmatprep.subr.mxu1 %v1980_v9 }
  0x42   :  { %299 = vmatpush1.msra.mxu0 %v1966_v4  ;;  %368 = vmatpush1.msra.mxu1 %v1986_v11 }
  0x43   :  { %300 = vmatprep.subr.mxu0 %v1969_v5  ;;  %369 = vmatprep.subr.mxu1 %v1992_v13 }
  0x44   :  { %301 = vmatpush1.msra.mxu0 %v1972_v6  ;;  %370 = vmatpush1.msra.mxu1 %v1994_v14 }
  0x45   :  { %302 = vmatprep.subr.mxu0 %v1975_v7  ;;  %371 = vmatprep.subr.mxu1 %v2000_v16 }
  0x46   :  { %303 = vmatpush1.msra.mxu0 %v1978_v8  ;;  %372 = vmatpush1.msra.mxu1 %v2006_v18 }
  0x47   :  { %304 = vmatprep.subr.mxu0 %v1983_v10  ;;  %373 = vmatprep.subr.mxu1 %v2008_v19 }
  0x48   :  { %305 = vmatpush1.msra.mxu0 %v1989_v12  ;;  %374 = vmatpush1.msra.mxu1 %v2014_v21 }
  0x49   :  { %306 = vmatprep.subr.mxu0 %v1997_v15  ;;  %375 = vmatprep.subr.mxu1 %v2020_v23 }
  0x4a   :  { %307 = vmatpush1.msra.mxu0 %v2003_v17  ;;  %376 = vmatpush1.msra.mxu1 %v2026_v25 }
  0x4b   :  { %308 = vmatprep.subr.mxu0 %v2011_v20  ;;  %377 = vmatprep.subr.mxu1 %v2032_v27 }
  0x4c   :  { %309 = vmatpush1.msra.mxu0 %v2017_v22  ;;  %378 = vmatpush1.msra.mxu1 %v2038_v29 }
  0x4d   :  { %310 = vmatprep.subr.mxu0 %v2023_v24  ;;  %379 = vmatprep.subr.mxu1 %v2044_v31 }
  0x4e   :  { %311 = vmatpush1.msra.mxu0 %v2029_v26  ;;  %380 = vmatpush1.msra.mxu1 %v2050_v33 }
  0x4f   :  { %312 = vmatprep.subr.mxu0 %v2035_v28  ;;  %381 = vmatprep.subr.mxu1 %v2056_v35 }
  0x50   :  { %313 = vmatpush1.msra.mxu0 %v2041_v30  ;;  %382 = vmatpush1.msra.mxu1 %v2062_v37 }
  0x51   :  { %314 = vmatprep.subr.mxu0 %v2047_v32  ;;  %383 = vmatprep.subr.mxu1 %v2068_v39 }
  0x52   :  { %315 = vmatpush1.msra.mxu0 %v2053_v34  ;;  %384 = vmatpush1.msra.mxu1 %v2074_v41 }
  0x53   :  { %316 = vmatprep.subr.mxu0 %v2059_v36  ;;  %385 = vmatprep.subr.mxu1 %v2080_v43 }
  0x54   :  { %317 = vmatpush1.msra.mxu0 %v2065_v38  ;;  %386 = vmatpush1.msra.mxu1 %v2086_v45 }
  0x55   :  { %318 = vmatprep.subr.mxu0 %v2071_v40  ;;  %387 = vmatprep.subr.mxu1 %v2092_v47 }
  0x56   :  { %319 = vmatpush1.msra.mxu0 %v2077_v42  ;;  %388 = vmatpush1.msra.mxu1 %v2098_v49 }
  0x57   :  { %320 = vmatprep.subr.mxu0 %v2083_v44  ;;  %389 = vmatprep.subr.mxu1 %v2104_v51 }
  0x58   :  { %321 = vmatpush1.msra.mxu0 %v2089_v46  ;;  %390 = vmatpush1.msra.mxu1 %v2110_v53 }
  0x59   :  { %322 = vmatprep.subr.mxu0 %v2095_v48  ;;  %391 = vmatprep.subr.mxu1 %v2116_v55  ;;  %v2875_v48 = vmov 0.0  }
  0x5a   :  { %323 = vmatpush1.msra.mxu0 %v2101_v50  ;;  %392 = vmatpush1.msra.mxu1 %v2122_v57 }
  0x5b   :  { %324 = vmatprep.subr.mxu0 %v2107_v52  ;;  %393 = vmatprep.subr.mxu1 %v2128_v59  ;;  %v117_v52 = vld [vmem:[#allocation4 + $0x8] sm:$0xff] }
  0x5c   :  { %325 = vmatpush1.msra.mxu0 %v2874_v0  ;;  %394 = vmatpush1.msra.mxu1 %v2132_v60  ;;  %v116_v0 = vld [vmem:[#allocation4] sm:$0xff] }
  0x5d   :  { %326 = vmatprep.subr.mxu0 %v2119_v56  ;;  %395 = vmatprep.subr.mxu1 %v2136_v61 }
  0x5e   :  { %327 = vmatpush1.msra.mxu0 %v2125_v58  ;;  %396 = vmatpush1.msra.mxu1 %v2140_v62 }
  0x5f   :  { %360 = vmatprep.mubr.f32.mxu0 %v2875_v48  ;;  %397 = vmatprep.subr.mxu1 %v2144_v63  ;;  %v119_v63 = vld [vmem:[#allocation4 + $0x18] sm:$0xff] }
  0x60   :  { %431 = vmatprep.mubr.f32.mxu1 %v2875_v48  ;;  %398 = vmatpush1.msra.mxu1 %v2147_v54  ;;  %v118_v48 = vld [vmem:[#allocation4 + $0x10] sm:$0xff] }
  0x61   :  { %473 = vmatprep.subr.mxu0 %v1959_v1  ;;  %544 = vmatprep.subr.mxu1 %v1980_v9 }
  0xff   :  { %v186_v56 = vpop.f32.mrf.mxu0 }
 0x100   :  { %v262_v61 = vadd.f32 %v186_v56, %v116_v0  ;;  %v257_v59 = vpop.f32.mrf.mxu1 }
 0x101   :  { %v188_v60 = vpop.f32.mrf.mxu0  ;;  %v264_v54 = vadd.f32 %v257_v59, %v118_v48  ;;  %v2881_v59 = vld [vmem:[#allocation22_spill] sm:$0xff] }
 0x102   :  { %v1582_v58 = vmul.f32 -1.442695, %v262_v61  ;;  %v263_v50 = vadd.f32 %v188_v60, %v117_v52  ;;  %v259_v57 = vpop.f32.mrf.mxu1 }
 0x103   :  { %v265_v46 = vadd.f32 %v259_v57, %v119_v63  ;;  %v2880_v57 = vld [vmem:[#allocation29_spill] sm:$0xff]  ;;  %v2882_v63 = vld [vmem:[#allocation31_spill] sm:$0xff] }
 0x104   :  { %1616 = vpow2.f32 %v1582_v58  ;;  %v1583_v62 = vmul.f32 -1.442695, %v263_v50 }
 0x105   :  { %v1584_v55 = vmul.f32 -1.442695, %v265_v46 }
 0x106   :  { %1618 = vpow2.f32 %v1583_v62 }
 0x107   :  { %1620 = vtanh.f32 %v264_v54  ;;  %v2878_v54 = vld [vmem:[#allocation27_spill] sm:$0xff] }
 0x108   :  { %1622 = vpow2.f32 %v1584_v55  ;;  %v2879_v55 = vld [vmem:[#allocation21_spill] sm:$0xff] }
 0x111   :  { %v1617_v1 = vpop.eup %1616 }
 0x112   :  { %v269_v44 = vadd.f32 1.0, %v1617_v1 }
 0x113   :  { %v1619_v9 = vpop.eup %1618 }
 0x114   :  { %1624 = vrcp.f32 %v269_v44  ;;  %v275_v0 = vadd.f32 1.0, %v1619_v9  ;;  %v1621_v56 = vpop.eup %1620  ;;  %v2876_v9 = vld [vmem:[#allocation25_spill] sm:$0xff]  ;;  %v2877_v44 = vld [vmem:[#allocation20_spill] sm:$0xff] }
 0x115   :  { %v1623_v52 = vpop.eup %1622 }
 0x116   :  { %1626 = vrcp.f32 %v275_v0  ;;  %v282_v60 = vadd.f32 1.0, %v1623_v52  ;;  %v2883_v0 = vld [vmem:[#allocation23_spill] sm:$0xff]  ;;  %v2885_v52 = vld [vmem:[#allocation24_spill] sm:$0xff] }
 0x118   :  { %1628 = vrcp.f32 %v282_v60  ;;  %v2888_v60 = vld [vmem:[#allocation34_spill] sm:$0xff] }
 0x121   :  { %v1625_v58 = vpop.eup %1624 }
 0x122   :  { %v286_v62 = vmul.f32 %v1625_v58, %v1621_v56  ;;  %v2884_v56 = vld [vmem:[#allocation32_spill] sm:$0xff]  ;;  %v2886_v58 = vld [vmem:[#allocation33_spill] sm:$0xff] }
 0x123   :  { %v1627_v50 = vpop.eup %1626 }
 0x124   :  { %v285_v61 = vmul.f32 0.0, %v1627_v50  ;;  %v2887_v50 = vld [vmem:[#allocation26_spill] sm:$0xff] }
 0x125   :  { %v1629_v46 = vpop.eup %1628 }
 0x126   :  { %v2221_v53 = vadd.f32 %v286_v62, %v285_v61  ;;  %v2889_v61 = vld [vmem:[#allocation28_spill] sm:$0xff]  ;;  %v2890_v62 = vld [vmem:[#allocation35_spill] sm:$0xff] }
 0x128   :  { %1630 = vtanh.f32 %v2221_v53 }
 0x135   :  { %v1631_v1 = vpop.eup %1630 }
 0x136   :  { %v289_v48 = vmul.f32 %v1631_v1, %v1629_v46  ;;  %v2891_v46 = vld [vmem:[#allocation30_spill] sm:$0xff]  ;;  %v2892_v1 = vmov 0.0  }
 0x138   :  { %290 = vst [vmem:[#allocation9] sm:$0xff] %v289_v48  ;;  %361 = vmatmul.mubr.f32.vlgmr.msra.gmra.mxu0 %v289_v48  ;;  %432 = vmatmul.mubr.f32.vlgmr.msra.gmra.mxu1 %v289_v48  ;;  %v2893_v48 = vld [vmem:[#allocation36_spill] sm:$0xff] }
 0x139   :  { %474 = vmatpush1.msra.mxu0 %v1961_v2  ;;  %545 = vmatpush1.msra.mxu1 %v1986_v11 }
 0x13a   :  { %475 = vmatprep.subr.mxu0 %v1963_v3  ;;  %546 = vmatprep.subr.mxu1 %v1992_v13 }
 0x13b   :  { %476 = vmatpush1.msra.mxu0 %v1966_v4  ;;  %547 = vmatpush1.msra.mxu1 %v1994_v14 }
 0x13c   :  { %477 = vmatprep.subr.mxu0 %v1969_v5  ;;  %548 = vmatprep.subr.mxu1 %v2000_v16 }
 0x13d   :  { %478 = vmatpush1.msra.mxu0 %v1972_v6  ;;  %549 = vmatpush1.msra.mxu1 %v2006_v18 }
 0x13e   :  { %479 = vmatprep.subr.mxu0 %v1975_v7  ;;  %550 = vmatprep.subr.mxu1 %v2008_v19 }
 0x13f   :  { %480 = vmatpush1.msra.mxu0 %v1978_v8  ;;  %551 = vmatpush1.msra.mxu1 %v2014_v21 }
 0x140   :  { %481 = vmatprep.subr.mxu0 %v1983_v10  ;;  %552 = vmatprep.subr.mxu1 %v2020_v23 }
 0x141   :  { %482 = vmatpush1.msra.mxu0 %v1989_v12  ;;  %553 = vmatpush1.msra.mxu1 %v2026_v25 }
 0x142   :  { %483 = vmatprep.subr.mxu0 %v1997_v15  ;;  %554 = vmatprep.subr.mxu1 %v2032_v27 }
 0x143   :  { %484 = vmatpush1.msra.mxu0 %v2003_v17  ;;  %555 = vmatpush1.msra.mxu1 %v2038_v29 }
 0x144   :  { %485 = vmatprep.subr.mxu0 %v2011_v20  ;;  %556 = vmatprep.subr.mxu1 %v2044_v31 }
 0x145   :  { %486 = vmatpush1.msra.mxu0 %v2017_v22  ;;  %557 = vmatpush1.msra.mxu1 %v2050_v33 }
 0x146   :  { %487 = vmatprep.subr.mxu0 %v2023_v24  ;;  %558 = vmatprep.subr.mxu1 %v2056_v35 }
 0x147   :  { %488 = vmatpush1.msra.mxu0 %v2029_v26  ;;  %559 = vmatpush1.msra.mxu1 %v2062_v37 }
 0x148   :  { %489 = vmatprep.subr.mxu0 %v2035_v28  ;;  %560 = vmatprep.subr.mxu1 %v2068_v39 }
 0x149   :  { %490 = vmatpush1.msra.mxu0 %v2041_v30  ;;  %561 = vmatpush1.msra.mxu1 %v2074_v41 }
 0x14a   :  { %491 = vmatprep.subr.mxu0 %v2047_v32  ;;  %562 = vmatprep.subr.mxu1 %v2080_v43 }
 0x14b   :  { %492 = vmatpush1.msra.mxu0 %v2053_v34  ;;  %563 = vmatpush1.msra.mxu1 %v2086_v45 }
 0x14c   :  { %493 = vmatprep.subr.mxu0 %v2059_v36  ;;  %564 = vmatprep.subr.mxu1 %v2092_v47 }
 0x14d   :  { %494 = vmatpush1.msra.mxu0 %v2065_v38  ;;  %565 = vmatpush1.msra.mxu1 %v2098_v49 }
 0x14e   :  { %495 = vmatprep.subr.mxu0 %v2071_v40  ;;  %566 = vmatprep.subr.mxu1 %v2104_v51 }
 0x14f   :  { %496 = vmatpush1.msra.mxu0 %v2077_v42  ;;  %567 = vmatpush1.msra.mxu1 %v2876_v9 }
 0x150   :  { %497 = vmatprep.subr.mxu0 %v2877_v44  ;;  %568 = vmatprep.subr.mxu1 %v2878_v54  ;;  %v294_v54 = vld [vmem:[#allocation4 + $0x30] sm:$0xff] }
 0x151   :  { %498 = vmatpush1.msra.mxu0 %v2879_v55  ;;  %569 = vmatpush1.msra.mxu1 %v2880_v57  ;;  %v295_v57 = vld [vmem:[#allocation4 + $0x38] sm:$0xff] }
 0x152   :  { %499 = vmatprep.subr.mxu0 %v2881_v59  ;;  %570 = vmatprep.subr.mxu1 %v2882_v63 }
 0x153   :  { %500 = vmatpush1.msra.mxu0 %v2883_v0  ;;  %571 = vmatpush1.msra.mxu1 %v2884_v56  ;;  %v2894_v56 = vld [vmem:[#allocation17_spill] sm:$0xff]  ;;  %v293_v0 = vld [vmem:[#allocation4 + $0x28] sm:$0xff] }
 0x154   :  { %501 = vmatprep.subr.mxu0 %v2885_v52  ;;  %572 = vmatprep.subr.mxu1 %v2886_v58  ;;  %v2895_v52 = vld [vmem:[#allocation18_spill] sm:$0xff]  ;;  %v292_v58 = vld [vmem:[#allocation4 + $0x20] sm:$0xff] }
 0x155   :  { %502 = vmatpush1.msra.mxu0 %v2887_v50  ;;  %573 = vmatpush1.msra.mxu1 %v2888_v60 }
 0x156   :  { %503 = vmatprep.subr.mxu0 %v2889_v61  ;;  %574 = vmatprep.subr.mxu1 %v2890_v62 }
 0x157   :  { %504 = vmatpush1.msra.mxu0 %v2891_v46  ;;  %537 = vmatprep.mubr.f32.mxu0 %v2892_v1 }
 0x158   :  { %575 = vmatpush1.msra.mxu1 %v2893_v48  ;;  %608 = vmatprep.mubr.f32.mxu1 %v2892_v1 }
 0x159   :  { %650 = vmatprep.subr.mxu0 %v2894_v56  ;;  %721 = vmatprep.subr.mxu1 %v2895_v52 }
 0x1f8   :  { %v362_v50 = vpop.f32.mrf.mxu0  ;;  %v433_v62 = vpop.f32.mrf.mxu1 }
 0x1f9   :  { %v438_v60 = vadd.f32 %v362_v50, %v292_v58  ;;  %v440_v56 = vadd.f32 %v433_v62, %v294_v54  ;;  %v2901_v62 = vld [vmem:[#allocation29_spill] sm:$0xff] }
 0x1fa   :  { %v364_v63 = vpop.f32.mrf.mxu0  ;;  %v435_v55 = vpop.f32.mrf.mxu1 }
 0x1fb   :  { %v1585_v61 = vmul.f32 -1.442695, %v438_v60  ;;  %v439_v59 = vadd.f32 %v364_v63, %v293_v0  ;;  %v441_v48 = vadd.f32 %v435_v55, %v295_v57 }
 0x1fd   :  { %1632 = vpow2.f32 %v1585_v61  ;;  %v1586_v46 = vmul.f32 -1.442695, %v439_v59  ;;  %v1587_v1 = vmul.f32 -1.442695, %v441_v48  ;;  %v2904_v48 = vld [vmem:[#allocation23_spill] sm:$0xff] }
 0x1ff   :  { %1634 = vpow2.f32 %v1586_v46  ;;  %v2902_v46 = vld [vmem:[#allocation22_spill] sm:$0xff] }
 0x200   :  { %1636 = vpow2.f32 %v1587_v1  ;;  %v2903_v1 = vld [vmem:[#allocation31_spill] sm:$0xff] }
 0x20a   :  { %v1633_v44 = vpop.eup %1632 }
 0x20b   :  { %v445_v9 = vadd.f32 1.0, %v1633_v44 }
 0x20c   :  { %v1635_v52 = vpop.eup %1634 }
 0x20d   :  { %1638 = vrcp.f32 %v445_v9  ;;  %v451_v42 = vadd.f32 1.0, %v1635_v52  ;;  %v1637_v58 = vpop.eup %1636  ;;  %v2898_v9 = vld [vmem:[#allocation20_spill] sm:$0xff]  ;;  %v2900_v52 = vld [vmem:[#allocation21_spill] sm:$0xff] }
 0x20e   :  { %1640 = vtanh.f32 %v440_v56  ;;  %v458_v59 = vadd.f32 1.0, %v1637_v58  ;;  %v2899_v56 = vld [vmem:[#allocation27_spill] sm:$0xff]  ;;  %v2905_v58 = vld [vmem:[#allocation32_spill] sm:$0xff] }
 0x20f   :  { %1642 = vrcp.f32 %v451_v42  ;;  %v2896_v42 = vld [vmem:[#allocation19_spill] sm:$0xff] }
 0x210   :  { %1644 = vrcp.f32 %v458_v59  ;;  %v2909_v59 = vld [vmem:[#allocation34_spill] sm:$0xff] }
 0x21a   :  { %v1639_v63 = vpop.eup %1638 }
 0x21b   :  { %v1641_v0 = vpop.eup %1640 }
 0x21c   :  { %v1643_v50 = vpop.eup %1642  ;;  %v462_v60 = vmul.f32 %v1641_v0, %v1639_v63  ;;  %v2906_v63 = vld [vmem:[#allocation24_spill] sm:$0xff]  ;;  %v2907_v0 = vld [vmem:[#allocation33_spill] sm:$0xff] }
 0x21d   :  { %v461_v61 = vmul.f32 %v1643_v50, %v2221_v53  ;;  %v1645_v44 = vpop.eup %1644  ;;  %v2897_v53 = vld [vmem:[#allocation25_spill] sm:$0xff]  ;;  %v2908_v50 = vld [vmem:[#allocation26_spill] sm:$0xff] }
 0x21f   :  { %v2291_v55 = vadd.f32 %v462_v60, %v461_v61  ;;  %v2910_v60 = vld [vmem:[#allocation28_spill] sm:$0xff]  ;;  %v2911_v61 = vld [vmem:[#allocation35_spill] sm:$0xff] }
 0x221   :  { %1646 = vtanh.f32 %v2291_v55 }
 0x22e   :  { %v1647_v54 = vpop.eup %1646 }
 0x22f   :  { %v465_v57 = vmul.f32 %v1647_v54, %v1645_v44  ;;  %v2912_v44 = vld [vmem:[#allocation30_spill] sm:$0xff]  ;;  %v2913_v54 = vmov 0.0  }
 0x231   :  { %467 = vst [vmem:[#allocation9 + $0x8] sm:$0xff] %v465_v57  ;;  %538 = vmatmul.mubr.f32.vlgmr.msra.gmra.mxu0 %v465_v57  ;;  %609 = vmatmul.mubr.f32.vlgmr.msra.gmra.mxu1 %v465_v57  ;;  %v2914_v57 = vld [vmem:[#allocation36_spill] sm:$0xff] }
 0x232   :  { %651 = vmatpush1.msra.mxu0 %v1961_v2  ;;  %722 = vmatpush1.msra.mxu1 %v1986_v11 }
 0x233   :  { %652 = vmatprep.subr.mxu0 %v1963_v3  ;;  %723 = vmatprep.subr.mxu1 %v1992_v13 }
 0x234   :  { %653 = vmatpush1.msra.mxu0 %v1966_v4  ;;  %724 = vmatpush1.msra.mxu1 %v1994_v14 }
 0x235   :  { %654 = vmatprep.subr.mxu0 %v1969_v5  ;;  %725 = vmatprep.subr.mxu1 %v2000_v16 }
 0x236   :  { %655 = vmatpush1.msra.mxu0 %v1972_v6  ;;  %726 = vmatpush1.msra.mxu1 %v2006_v18 }
 0x237   :  { %656 = vmatprep.subr.mxu0 %v1975_v7  ;;  %727 = vmatprep.subr.mxu1 %v2008_v19 }
 0x238   :  { %657 = vmatpush1.msra.mxu0 %v1978_v8  ;;  %728 = vmatpush1.msra.mxu1 %v2014_v21 }
 0x239   :  { %658 = vmatprep.subr.mxu0 %v1983_v10  ;;  %729 = vmatprep.subr.mxu1 %v2020_v23 }
 0x23a   :  { %659 = vmatpush1.msra.mxu0 %v1989_v12  ;;  %730 = vmatpush1.msra.mxu1 %v2026_v25 }
 0x23b   :  { %660 = vmatprep.subr.mxu0 %v1997_v15  ;;  %731 = vmatprep.subr.mxu1 %v2032_v27 }
 0x23c   :  { %661 = vmatpush1.msra.mxu0 %v2003_v17  ;;  %732 = vmatpush1.msra.mxu1 %v2038_v29 }
 0x23d   :  { %662 = vmatprep.subr.mxu0 %v2011_v20  ;;  %733 = vmatprep.subr.mxu1 %v2044_v31 }
 0x23e   :  { %663 = vmatpush1.msra.mxu0 %v2017_v22  ;;  %734 = vmatpush1.msra.mxu1 %v2050_v33 }
 0x23f   :  { %664 = vmatprep.subr.mxu0 %v2023_v24  ;;  %735 = vmatprep.subr.mxu1 %v2056_v35 }
 0x240   :  { %665 = vmatpush1.msra.mxu0 %v2029_v26  ;;  %736 = vmatpush1.msra.mxu1 %v2062_v37 }
 0x241   :  { %666 = vmatprep.subr.mxu0 %v2035_v28  ;;  %737 = vmatprep.subr.mxu1 %v2068_v39 }
 0x242   :  { %667 = vmatpush1.msra.mxu0 %v2041_v30  ;;  %738 = vmatpush1.msra.mxu1 %v2074_v41 }
 0x243   :  { %668 = vmatprep.subr.mxu0 %v2047_v32  ;;  %739 = vmatprep.subr.mxu1 %v2080_v43 }
 0x244   :  { %669 = vmatpush1.msra.mxu0 %v2053_v34  ;;  %740 = vmatpush1.msra.mxu1 %v2086_v45 }
 0x245   :  { %670 = vmatprep.subr.mxu0 %v2059_v36  ;;  %741 = vmatprep.subr.mxu1 %v2092_v47 }
 0x246   :  { %671 = vmatpush1.msra.mxu0 %v2065_v38  ;;  %742 = vmatpush1.msra.mxu1 %v2098_v49 }
 0x247   :  { %672 = vmatprep.subr.mxu0 %v2071_v40  ;;  %743 = vmatprep.subr.mxu1 %v2104_v51 }
 0x248   :  { %673 = vmatpush1.msra.mxu0 %v2896_v42  ;;  %744 = vmatpush1.msra.mxu1 %v2897_v53 }
 0x249   :  { %674 = vmatprep.subr.mxu0 %v2898_v9  ;;  %745 = vmatprep.subr.mxu1 %v2899_v56  ;;  %v471_v56 = vld [vmem:[#allocation4 + $0x50] sm:$0xff] }
 0x24a   :  { %675 = vmatpush1.msra.mxu0 %v2900_v52  ;;  %746 = vmatpush1.msra.mxu1 %v2901_v62  ;;  %v472_v62 = vld [vmem:[#allocation4 + $0x58] sm:$0xff] }
 0x24b   :  { %676 = vmatprep.subr.mxu0 %v2902_v46  ;;  %747 = vmatprep.subr.mxu1 %v2903_v1 }
 0x24c   :  { %677 = vmatpush1.msra.mxu0 %v2904_v48  ;;  %748 = vmatpush1.msra.mxu1 %v2905_v58  ;;  %v2915_v58 = vld [vmem:[#allocation17_spill] sm:$0xff]  ;;  %v470_v48 = vld [vmem:[#allocation4 + $0x48] sm:$0xff] }
 0x24d   :  { %678 = vmatprep.subr.mxu0 %v2906_v63  ;;  %749 = vmatprep.subr.mxu1 %v2907_v0  ;;  %v2916_v63 = vld [vmem:[#allocation18_spill] sm:$0xff]  ;;  %v469_v0 = vld [vmem:[#allocation4 + $0x40] sm:$0xff] }
 0x24e   :  { %679 = vmatpush1.msra.mxu0 %v2908_v50  ;;  %750 = vmatpush1.msra.mxu1 %v2909_v59 }
 0x24f   :  { %680 = vmatprep.subr.mxu0 %v2910_v60  ;;  %751 = vmatprep.subr.mxu1 %v2911_v61 }
 0x250   :  { %681 = vmatpush1.msra.mxu0 %v2912_v44  ;;  %714 = vmatprep.mubr.f32.mxu0 %v2913_v54 }
 0x251   :  { %752 = vmatpush1.msra.mxu1 %v2914_v57  ;;  %785 = vmatprep.mubr.f32.mxu1 %v2913_v54 }
 0x252   :  { %827 = vmatprep.subr.mxu0 %v2915_v58  ;;  %898 = vmatprep.subr.mxu1 %v2916_v63 }
 0x2f1   :  { %v539_v50 = vpop.f32.mrf.mxu0  ;;  %v610_v61 = vpop.f32.mrf.mxu1 }
 0x2f2   :  { %v615_v59 = vadd.f32 %v539_v50, %v469_v0  ;;  %v617_v58 = vadd.f32 %v610_v61, %v471_v56 }
 0x2f3   :  { %v541_v1 = vpop.f32.mrf.mxu0  ;;  %v612_v52 = vpop.f32.mrf.mxu1 }
 0x2f4   :  { %v1588_v60 = vmul.f32 -1.442695, %v615_v59  ;;  %v616_v46 = vadd.f32 %v541_v1, %v470_v48  ;;  %v618_v57 = vadd.f32 %v612_v52, %v472_v62 }
 0x2f6   :  { %1648 = vpow2.f32 %v1588_v60  ;;  %v1589_v44 = vmul.f32 -1.442695, %v616_v46  ;;  %v1590_v54 = vmul.f32 -1.442695, %v618_v57 }
 0x2f8   :  { %1650 = vpow2.f32 %v1589_v44 }
 0x2f9   :  { %1652 = vpow2.f32 %v1590_v54 }
 0x303   :  { %v1649_v9 = vpop.eup %1648 }
 0x304   :  { %v622_v53 = vadd.f32 1.0, %v1649_v9 }
 0x305   :  { %v1651_v63 = vpop.eup %1650 }
 0x306   :  { %1654 = vrcp.f32 %v622_v53  ;;  %v628_v42 = vadd.f32 1.0, %v1651_v63  ;;  %v1653_v0 = vpop.eup %1652 }
 0x307   :  { %1656 = vtanh.f32 %v617_v58  ;;  %v635_v46 = vadd.f32 1.0, %v1653_v0  ;;  %v2436_v0 = vld [vmem:[#allocation7 + $0x1e0] sm:$0xff] }
 0x308   :  { %1658 = vrcp.f32 %v628_v42 }
 0x309   :  { %1660 = vrcp.f32 %v635_v46  ;;  %v2448_v46 = vld [vmem:[#allocation7 + $0x1c0] sm:$0xff] }
 0x313   :  { %v1655_v1 = vpop.eup %1654 }
 0x314   :  { %v1657_v48 = vpop.eup %1656 }
 0x315   :  { %v1659_v50 = vpop.eup %1658  ;;  %v639_v59 = vmul.f32 %v1657_v48, %v1655_v1  ;;  %v2439_v1 = vld [vmem:[#allocation7 + $0x1f0] sm:$0xff]  ;;  %v2442_v48 = vld [vmem:[#allocation7 + $0x1c8] sm:$0xff] }
 0x316   :  { %v638_v60 = vmul.f32 %v1659_v50, %v2291_v55  ;;  %v1661_v9 = vpop.eup %1660  ;;  %v2445_v50 = vld [vmem:[#allocation7 + $0x1d8] sm:$0xff] }
 0x318   :  { %v2361_v52 = vadd.f32 %v639_v59, %v638_v60  ;;  %v2451_v59 = vld [vmem:[#allocation7 + $0x1d0] sm:$0xff]  ;;  %v2454_v60 = vld [vmem:[#allocation7 + $0x1a8] sm:$0xff] }
 0x31a   :  { %1662 = vtanh.f32 %v2361_v52 }
 0x327   :  { %v1663_v56 = vpop.eup %1662 }
 0x328   :  { %v642_v62 = vmul.f32 %v1663_v56, %v1661_v9  ;;  %v2460_v9 = vld [vmem:[#allocation7 + $0x1a0] sm:$0xff]  ;;  %v2463_v56 = vld [vmem:[#allocation7 + $0x1b0] sm:$0xff] }
 0x32a   :  { %644 = vst [vmem:[#allocation9 + $0x10] sm:$0xff] %v642_v62  ;;  %715 = vmatmul.mubr.f32.vlgmr.msra.gmra.mxu0 %v642_v62  ;;  %786 = vmatmul.mubr.f32.vlgmr.msra.gmra.mxu1 %v642_v62  ;;  %v2466_v62 = vld [vmem:[#allocation7 + $0x188] sm:$0xff] }
 0x32b   :  { %828 = vmatpush1.msra.mxu0 %v1961_v2  ;;  %899 = vmatpush1.msra.mxu1 %v1986_v11  ;;  %v2917_v2 = vld [vmem:[#allocation19_spill] sm:$0xff] }
 0x32c   :  { %829 = vmatprep.subr.mxu0 %v1963_v3  ;;  %900 = vmatprep.subr.mxu1 %v1992_v13  ;;  %v2918_v3 = vld [vmem:[#allocation25_spill] sm:$0xff]  ;;  %v2925_v11 = vld [vmem:[#allocation23_spill] sm:$0xff]  ;;  %v2927_v13 = vld [vmem:[#allocation24_spill] sm:$0xff] }
 0x32d   :  { %830 = vmatpush1.msra.mxu0 %v1966_v4  ;;  %901 = vmatpush1.msra.mxu1 %v1994_v14  ;;  %v2919_v4 = vld [vmem:[#allocation20_spill] sm:$0xff]  ;;  %v2928_v14 = vld [vmem:[#allocation33_spill] sm:$0xff] }
 0x32e   :  { %831 = vmatprep.subr.mxu0 %v1969_v5  ;;  %902 = vmatprep.subr.mxu1 %v2000_v16  ;;  %v2920_v5 = vld [vmem:[#allocation27_spill] sm:$0xff]  ;;  %v2930_v16 = vld [vmem:[#allocation34_spill] sm:$0xff] }
 0x32f   :  { %832 = vmatpush1.msra.mxu0 %v1972_v6  ;;  %903 = vmatpush1.msra.mxu1 %v2006_v18  ;;  %v2921_v6 = vld [vmem:[#allocation21_spill] sm:$0xff]  ;;  %v2932_v18 = vld [vmem:[#allocation35_spill] sm:$0xff] }
 0x330   :  { %833 = vmatprep.subr.mxu0 %v1975_v7  ;;  %904 = vmatprep.subr.mxu1 %v2008_v19  ;;  %v2922_v7 = vld [vmem:[#allocation29_spill] sm:$0xff]  ;;  %v2933_v19 = vld [vmem:[#allocation30_spill] sm:$0xff] }
 0x331   :  { %834 = vmatpush1.msra.mxu0 %v1978_v8  ;;  %905 = vmatpush1.msra.mxu1 %v2014_v21  ;;  %v2923_v8 = vld [vmem:[#allocation22_spill] sm:$0xff]  ;;  %v2935_v21 = vld [vmem:[#allocation36_spill] sm:$0xff] }
 0x332   :  { %835 = vmatprep.subr.mxu0 %v1983_v10  ;;  %906 = vmatprep.subr.mxu1 %v2020_v23  ;;  %v2924_v10 = vld [vmem:[#allocation31_spill] sm:$0xff]  ;;  %v2937_v23 = vld [vmem:[#allocation18_spill] sm:$0xff] }
 0x333   :  { %836 = vmatpush1.msra.mxu0 %v1989_v12  ;;  %907 = vmatpush1.msra.mxu1 %v2026_v25  ;;  %v2926_v12 = vld [vmem:[#allocation32_spill] sm:$0xff] }
 0x334   :  { %837 = vmatprep.subr.mxu0 %v1997_v15  ;;  %908 = vmatprep.subr.mxu1 %v2032_v27  ;;  %v2929_v15 = vld [vmem:[#allocation26_spill] sm:$0xff] }
 0x335   :  { %838 = vmatpush1.msra.mxu0 %v2003_v17  ;;  %909 = vmatpush1.msra.mxu1 %v2038_v29  ;;  %v2931_v17 = vld [vmem:[#allocation28_spill] sm:$0xff] }
 0x336   :  { %839 = vmatprep.subr.mxu0 %v2011_v20  ;;  %910 = vmatprep.subr.mxu1 %v2044_v31  ;;  %v2934_v20 = vmov 0.0  }
 0x337   :  { %840 = vmatpush1.msra.mxu0 %v2017_v22  ;;  %911 = vmatpush1.msra.mxu1 %v2050_v33  ;;  %v2428_v22 = vld [vmem:[#allocation7 + $0x1e8] sm:$0xff]  ;;  %v649_v33 = vld [vmem:[#allocation4 + $0x78] sm:$0xff] }
 0x338   :  { %841 = vmatprep.subr.mxu0 %v2023_v24  ;;  %912 = vmatprep.subr.mxu1 %v2056_v35  ;;  %2936 = vst [vmem:[#allocation17_spill] sm:$0xff] %v2428_v22  ;;  %v646_v24 = vld [vmem:[#allocation4 + $0x60] sm:$0xff] }
 0x339   :  { %842 = vmatpush1.msra.mxu0 %v2029_v26  ;;  %913 = vmatpush1.msra.mxu1 %v2062_v37  ;;  %v647_v26 = vld [vmem:[#allocation4 + $0x68] sm:$0xff] }
 0x33a   :  { %843 = vmatprep.subr.mxu0 %v2035_v28  ;;  %914 = vmatprep.subr.mxu1 %v2068_v39 }
 0x33b   :  { %844 = vmatpush1.msra.mxu0 %v2041_v30  ;;  %915 = vmatpush1.msra.mxu1 %v2074_v41 }
 0x33c   :  { %845 = vmatprep.subr.mxu0 %v2047_v32  ;;  %916 = vmatprep.subr.mxu1 %v2080_v43 }
 0x33d   :  { %846 = vmatpush1.msra.mxu0 %v2053_v34  ;;  %917 = vmatpush1.msra.mxu1 %v2086_v45 }
 0x33e   :  { %847 = vmatprep.subr.mxu0 %v2059_v36  ;;  %918 = vmatprep.subr.mxu1 %v2092_v47  ;;  %v648_v36 = vld [vmem:[#allocation4 + $0x70] sm:$0xff] }
 0x33f   :  { %848 = vmatpush1.msra.mxu0 %v2065_v38  ;;  %919 = vmatpush1.msra.mxu1 %v2098_v49 }
 0x340   :  { %849 = vmatprep.subr.mxu0 %v2071_v40  ;;  %920 = vmatprep.subr.mxu1 %v2104_v51 }
 0x341   :  { %850 = vmatpush1.msra.mxu0 %v2917_v2  ;;  %921 = vmatpush1.msra.mxu1 %v2918_v3  ;;  %v2469_v2 = vld [vmem:[#allocation7 + $0x198] sm:$0xff] }
 0x342   :  { %851 = vmatprep.subr.mxu0 %v2919_v4  ;;  %922 = vmatprep.subr.mxu1 %v2920_v5  ;;  %v2472_v4 = vld [vmem:[#allocation7 + $0x180] sm:$0xff] }
 0x343   :  { %852 = vmatpush1.msra.mxu0 %v2921_v6  ;;  %923 = vmatpush1.msra.mxu1 %v2922_v7  ;;  %v2475_v6 = vld [vmem:[#allocation7 + $0x190] sm:$0xff] }
 0x344   :  { %853 = vmatprep.subr.mxu0 %v2923_v8  ;;  %924 = vmatprep.subr.mxu1 %v2924_v10  ;;  %v2478_v8 = vld [vmem:[#allocation7 + $0x168] sm:$0xff] }
 0x345   :  { %854 = vmatpush1.msra.mxu0 %v2925_v11  ;;  %925 = vmatpush1.msra.mxu1 %v2926_v12  ;;  %v2481_v11 = vld [vmem:[#allocation7 + $0x178] sm:$0xff] }
 0x346   :  { %855 = vmatprep.subr.mxu0 %v2927_v13  ;;  %926 = vmatprep.subr.mxu1 %v2928_v14  ;;  %v2484_v13 = vld [vmem:[#allocation7 + $0x160] sm:$0xff] }
 0x347   :  { %856 = vmatpush1.msra.mxu0 %v2929_v15  ;;  %927 = vmatpush1.msra.mxu1 %v2930_v16  ;;  %v2487_v15 = vld [vmem:[#allocation7 + $0x170] sm:$0xff] }
 0x348   :  { %857 = vmatprep.subr.mxu0 %v2931_v17  ;;  %928 = vmatprep.subr.mxu1 %v2932_v18  ;;  %v2490_v17 = vld [vmem:[#allocation7 + $0x148] sm:$0xff] }
 0x349   :  { %858 = vmatpush1.msra.mxu0 %v2933_v19  ;;  %891 = vmatprep.mubr.f32.mxu0 %v2934_v20 }
 0x34a   :  { %929 = vmatpush1.msra.mxu1 %v2935_v21  ;;  %962 = vmatprep.mubr.f32.mxu1 %v2934_v20 }
 0x34b   :  { %1004 = vmatprep.subr.mxu0 %v2428_v22  ;;  %1075 = vmatprep.subr.mxu1 %v2937_v23  ;;  %v2493_v23 = vld [vmem:[#allocation7 + $0x158] sm:$0xff] }
 0x3ea   :  { %v716_v25 = vpop.f32.mrf.mxu0  ;;  %v787_v31 = vpop.f32.mrf.mxu1 }
 0x3eb   :  { %v792_v27 = vadd.f32 %v716_v25, %v646_v24  ;;  %v794_v39 = vadd.f32 %v787_v31, %v648_v36  ;;  %v2496_v24 = vld [vmem:[#allocation7 + $0x140] sm:$0xff]  ;;  %v2499_v25 = vld [vmem:[#allocation7 + $0x150] sm:$0xff]  ;;  %v2517_v31 = vld [vmem:[#allocation7 + $0x118] sm:$0xff] }
 0x3ec   :  { %v718_v28 = vpop.f32.mrf.mxu0  ;;  %v789_v34 = vpop.f32.mrf.mxu1  ;;  %v2532_v36 = vld [vmem:[#allocation7 + $0xe0] sm:$0xff] }
 0x3ed   :  { %v1591_v29 = vmul.f32 -1.442695, %v792_v27  ;;  %v793_v30 = vadd.f32 %v718_v28, %v647_v26  ;;  %v795_v35 = vadd.f32 %v789_v34, %v649_v33  ;;  %v2502_v26 = vld [vmem:[#allocation7 + $0x128] sm:$0xff]  ;;  %v2505_v27 = vld [vmem:[#allocation7 + $0x138] sm:$0xff]  ;;  %v2508_v28 = vld [vmem:[#allocation7 + $0x120] sm:$0xff] }
 0x3ee   :  { %v2523_v33 = vld [vmem:[#allocation7 + $0x110] sm:$0xff]  ;;  %v2526_v34 = vld [vmem:[#allocation7 + $0xe8] sm:$0xff] }
 0x3ef   :  { %1664 = vpow2.f32 %v1591_v29  ;;  %v1592_v32 = vmul.f32 -1.442695, %v793_v30  ;;  %v1593_v37 = vmul.f32 -1.442695, %v795_v35  ;;  %v2511_v29 = vld [vmem:[#allocation7 + $0x130] sm:$0xff]  ;;  %v2514_v30 = vld [vmem:[#allocation7 + $0x108] sm:$0xff] }
 0x3f0   :  { %v2529_v35 = vld [vmem:[#allocation7 + $0xf8] sm:$0xff] }
 0x3f1   :  { %1666 = vpow2.f32 %v1592_v32  ;;  %v2520_v32 = vld [vmem:[#allocation7 + $0x100] sm:$0xff] }
 0x3f2   :  { %1668 = vpow2.f32 %v1593_v37  ;;  %v2535_v37 = vld [vmem:[#allocation7 + $0xf0] sm:$0xff] }
 0x3fc   :  { %v1665_v38 = vpop.eup %1664 }
 0x3fd   :  { %v799_v40 = vadd.f32 1.0, %v1665_v38  ;;  %v2538_v38 = vld [vmem:[#allocation7 + $0xc8] sm:$0xff] }
 0x3fe   :  { %v1667_v41 = vpop.eup %1666 }
 0x3ff   :  { %1670 = vrcp.f32 %v799_v40  ;;  %v805_v43 = vadd.f32 1.0, %v1667_v41  ;;  %v1669_v45 = vpop.eup %1668  ;;  %v2544_v40 = vld [vmem:[#allocation7 + $0xc0] sm:$0xff]  ;;  %v2547_v41 = vld [vmem:[#allocation7 + $0xd0] sm:$0xff] }
 0x400   :  { %1672 = vtanh.f32 %v794_v39  ;;  %v812_v53 = vadd.f32 1.0, %v1669_v45  ;;  %v2541_v39 = vld [vmem:[#allocation7 + $0xd8] sm:$0xff] }
 0x401   :  { %1674 = vrcp.f32 %v805_v43  ;;  %v2550_v43 = vld [vmem:[#allocation7 + $0xa8] sm:$0xff]  ;;  %v2553_v45 = vld [vmem:[#allocation7 + $0xb8] sm:$0xff] }
 0x402   :  { %1676 = vrcp.f32 %v812_v53  ;;  %v2568_v53 = vld [vmem:[#allocation7 + $0x68] sm:$0xff] }
 0x403   :  { %2939 = vst [vmem:[#allocation25_spill] sm:$0xff] %v2568_v53 }
 0x40c   :  { %v1671_v47 = vpop.eup %1670 }
 0x40d   :  { %v1673_v55 = vpop.eup %1672 }
 0x40e   :  { %v1675_v42 = vpop.eup %1674  ;;  %v816_v63 = vmul.f32 %v1673_v55, %v1671_v47  ;;  %v2556_v47 = vld [vmem:[#allocation7 + $0xa0] sm:$0xff]  ;;  %v2560_v55 = vld [vmem:[#allocation7 + $0x88] sm:$0xff] }
 0x40f   :  { %v815_v61 = vmul.f32 %v1675_v42, %v2361_v52  ;;  %v1677_v54 = vpop.eup %1676  ;;  %v2457_v52 = vld [vmem:[#allocation7 + $0x1b8] sm:$0xff]  ;;  %v2564_v42 = vld [vmem:[#allocation7 + $0x80] sm:$0xff] }
 0x410   :  { %2938 = vst [vmem:[#allocation19_spill] sm:$0xff] %v2564_v42 }
 0x411   :  { %v2433_v44 = vadd.f32 %v816_v63, %v815_v61  ;;  %v2572_v63 = vld [vmem:[#allocation7 + $0x60] sm:$0xff] }
 0x412   :  { %2940 = vst [vmem:[#allocation20_spill] sm:$0xff] %v2572_v63 }
 0x413   :  { %1678 = vtanh.f32 %v2433_v44 }
 0x420   :  { %v1679_v57 = vpop.eup %1678 }
 0x421   :  { %v819_v58 = vmul.f32 %v1679_v57, %v1677_v54 }
 0x423   :  { %821 = vst [vmem:[#allocation9 + $0x18] sm:$0xff] %v819_v58  ;;  %892 = vmatmul.mubr.f32.vlgmr.msra.gmra.mxu0 %v819_v58  ;;  %963 = vmatmul.mubr.f32.vlgmr.msra.gmra.mxu1 %v819_v58 }
 0x424   :  { %1005 = vmatpush1.msra.mxu0 %v2436_v0  ;;  %1076 = vmatpush1.msra.mxu1 %v2439_v1 }
 0x425   :  { %1006 = vmatprep.subr.mxu0 %v2442_v48  ;;  %1077 = vmatprep.subr.mxu1 %v2445_v50 }
 0x426   :  { %1007 = vmatpush1.msra.mxu0 %v2448_v46  ;;  %1078 = vmatpush1.msra.mxu1 %v2451_v59 }
 0x427   :  { %1008 = vmatprep.subr.mxu0 %v2454_v60  ;;  %1079 = vmatprep.subr.mxu1 %v2457_v52 }
 0x428   :  { %1009 = vmatpush1.msra.mxu0 %v2460_v9  ;;  %1080 = vmatpush1.msra.mxu1 %v2463_v56 }
 0x429   :  { %1010 = vmatprep.subr.mxu0 %v2466_v62  ;;  %1081 = vmatprep.subr.mxu1 %v2469_v2 }
 0x42a   :  { %1011 = vmatpush1.msra.mxu0 %v2472_v4  ;;  %1082 = vmatpush1.msra.mxu1 %v2475_v6 }
 0x42b   :  { %1012 = vmatprep.subr.mxu0 %v2478_v8  ;;  %1083 = vmatprep.subr.mxu1 %v2481_v11 }
 0x42c   :  { %1013 = vmatpush1.msra.mxu0 %v2484_v13  ;;  %1084 = vmatpush1.msra.mxu1 %v2487_v15 }
 0x42d   :  { %1014 = vmatprep.subr.mxu0 %v2490_v17  ;;  %1085 = vmatprep.subr.mxu1 %v2493_v23 }
 0x42e   :  { %1015 = vmatpush1.msra.mxu0 %v2496_v24  ;;  %1086 = vmatpush1.msra.mxu1 %v2499_v25 }
 0x42f   :  { %1016 = vmatprep.subr.mxu0 %v2502_v26  ;;  %1087 = vmatprep.subr.mxu1 %v2505_v27 }
 0x430   :  { %1017 = vmatpush1.msra.mxu0 %v2508_v28  ;;  %1088 = vmatpush1.msra.mxu1 %v2511_v29 }
 0x431   :  { %1018 = vmatprep.subr.mxu0 %v2514_v30  ;;  %1089 = vmatprep.subr.mxu1 %v2517_v31 }
 0x432   :  { %1019 = vmatpush1.msra.mxu0 %v2520_v32  ;;  %1090 = vmatpush1.msra.mxu1 %v2523_v33 }
 0x433   :  { %1020 = vmatprep.subr.mxu0 %v2526_v34  ;;  %1091 = vmatprep.subr.mxu1 %v2529_v35 }
 0x434   :  { %1021 = vmatpush1.msra.mxu0 %v2532_v36  ;;  %1092 = vmatpush1.msra.mxu1 %v2535_v37 }
 0x435   :  { %1022 = vmatprep.subr.mxu0 %v2538_v38  ;;  %1093 = vmatprep.subr.mxu1 %v2541_v39 }
 0x436   :  { %1023 = vmatpush1.msra.mxu0 %v2544_v40  ;;  %1094 = vmatpush1.msra.mxu1 %v2547_v41 }
 0x437   :  { %1024 = vmatprep.subr.mxu0 %v2550_v43  ;;  %1095 = vmatprep.subr.mxu1 %v2553_v45 }
 0x438   :  { %1025 = vmatpush1.msra.mxu0 %v2556_v47  ;;  %1096 = vmatpush1.msra.mxu1 %v2098_v49  ;;  %v2576_v49 = vld [vmem:[#allocation7 + $0x48] sm:$0xff] }
 0x439   :  { %1026 = vmatprep.subr.mxu0 %v2560_v55  ;;  %1097 = vmatprep.subr.mxu1 %v2104_v51  ;;  %2941 = vst [vmem:[#allocation27_spill] sm:$0xff] %v2576_v49  ;;  %v2580_v51 = vld [vmem:[#allocation7 + $0x40] sm:$0xff] }
 0x43a   :  { %1027 = vmatpush1.msra.mxu0 %v2564_v42  ;;  %1098 = vmatpush1.msra.mxu1 %v2918_v3  ;;  %2942 = vst [vmem:[#allocation21_spill] sm:$0xff] %v2580_v51  ;;  %v2584_v3 = vld [vmem:[#allocation7 + $0x28] sm:$0xff] }
 0x43b   :  { %1028 = vmatprep.subr.mxu0 %v2568_v53  ;;  %1099 = vmatprep.subr.mxu1 %v2920_v5  ;;  %2943 = vst [vmem:[#allocation29_spill] sm:$0xff] %v2584_v3  ;;  %v2588_v5 = vld [vmem:[#allocation7 + $0x20] sm:$0xff] }
 0x43c   :  { %1029 = vmatpush1.msra.mxu0 %v2572_v63  ;;  %1100 = vmatpush1.msra.mxu1 %v2922_v7  ;;  %2944 = vst [vmem:[#allocation22_spill] sm:$0xff] %v2588_v5  ;;  %v2592_v7 = vld [vmem:[#allocation7 + $0x8] sm:$0xff] }
 0x43d   :  { %1030 = vmatprep.subr.mxu0 %v2576_v49  ;;  %1101 = vmatprep.subr.mxu1 %v2924_v10  ;;  %2945 = vst [vmem:[#allocation31_spill] sm:$0xff] %v2592_v7  ;;  %v2601_v10 = vld [vmem:[#allocation7 + $0x1f8] sm:$0xff] }
 0x43e   :  { %1031 = vmatpush1.msra.mxu0 %v2580_v51  ;;  %1102 = vmatpush1.msra.mxu1 %v2926_v12  ;;  %2946 = vst [vmem:[#allocation23_spill] sm:$0xff] %v2601_v10  ;;  %v823_v12 = vld [vmem:[#allocation4 + $0x80] sm:$0xff] }
 0x43f   :  { %1032 = vmatprep.subr.mxu0 %v2584_v3  ;;  %1103 = vmatprep.subr.mxu1 %v2928_v14 }
 0x440   :  { %1033 = vmatpush1.msra.mxu0 %v2588_v5  ;;  %1104 = vmatpush1.msra.mxu1 %v2930_v16  ;;  %v824_v16 = vld [vmem:[#allocation4 + $0x88] sm:$0xff]  ;;  %v825_v5 = vld [vmem:[#allocation4 + $0x90] sm:$0xff] }
 0x441   :  { %1034 = vmatprep.subr.mxu0 %v2592_v7  ;;  %1105 = vmatprep.subr.mxu1 %v2932_v18 }
 0x442   :  { %1035 = vmatpush1.msra.mxu0 %v2933_v19  ;;  %1068 = vmatprep.mubr.f32.mxu0 %v2934_v20 }
 0x443   :  { %1106 = vmatpush1.msra.mxu1 %v2935_v21  ;;  %1139 = vmatprep.mubr.f32.mxu1 %v2934_v20  ;;  %v826_v21 = vld [vmem:[#allocation4 + $0x98] sm:$0xff] }
 0x444   :  { %1181 = vmatprep.subr.mxu0 %v2428_v22  ;;  %1252 = vmatprep.subr.mxu1 %v2601_v10 }
 0x4e3   :  { %v893_v14 = vpop.f32.mrf.mxu0  ;;  %v964_v19 = vpop.f32.mrf.mxu1 }
 0x4e4   :  { %v969_v61 = vadd.f32 %v893_v14, %v823_v12  ;;  %v971_v51 = vadd.f32 %v964_v19, %v825_v5  ;;  %v2949_v5 = vld [vmem:[#allocation20_spill] sm:$0xff]  ;;  %v2951_v19 = vld [vmem:[#allocation27_spill] sm:$0xff] }
 0x4e5   :  { %v895_v54 = vpop.f32.mrf.mxu0  ;;  %v966_v7 = vpop.f32.mrf.mxu1 }
 0x4e6   :  { %v1594_v18 = vmul.f32 -1.442695, %v969_v61  ;;  %v970_v57 = vadd.f32 %v895_v54, %v824_v16  ;;  %v972_v20 = vadd.f32 %v966_v7, %v826_v21  ;;  %v2953_v21 = vld [vmem:[#allocation21_spill] sm:$0xff] }
 0x4e8   :  { %1680 = vpow2.f32 %v1594_v18  ;;  %v1595_v58 = vmul.f32 -1.442695, %v970_v57  ;;  %v1596_v22 = vmul.f32 -1.442695, %v972_v20 }
 0x4ea   :  { %1682 = vpow2.f32 %v1595_v58  ;;  %v2669_v58 = vld [vmem:[#allocation7 + $0x58] sm:$0xff] }
 0x4eb   :  { %1684 = vpow2.f32 %v1596_v22  ;;  %2952 = vst [vmem:[#allocation26_spill] sm:$0xff] %v2669_v58 }
 0x4f5   :  { %v1681_v3 = vpop.eup %1680 }
 0x4f6   :  { %v976_v49 = vadd.f32 1.0, %v1681_v3 }
 0x4f7   :  { %v1683_v10 = vpop.eup %1682 }
 0x4f8   :  { %1686 = vrcp.f32 %v976_v49  ;;  %v982_v63 = vadd.f32 1.0, %v1683_v10  ;;  %v1685_v12 = vpop.eup %1684  ;;  %v2657_v49 = vld [vmem:[#allocation7 + $0x90] sm:$0xff] }
 0x4f9   :  { %1688 = vtanh.f32 %v971_v51  ;;  %v989_v54 = vadd.f32 1.0, %v1685_v12  ;;  %2947 = vst [vmem:[#allocation32_spill] sm:$0xff] %v2657_v49  ;;  %v2661_v51 = vld [vmem:[#allocation7 + $0x78] sm:$0xff]  ;;  %v2665_v10 = vld [vmem:[#allocation7 + $0x70] sm:$0xff] }
 0x4fa   :  { %1690 = vrcp.f32 %v982_v63  ;;  %v2653_v63 = vld [vmem:[#allocation7 + $0x98] sm:$0xff]  ;;  %2948 = vst [vmem:[#allocation24_spill] sm:$0xff] %v2661_v51  ;;  %2950 = vst [vmem:[#allocation33_spill] sm:$0xff] %v2665_v10  ;;  %v2673_v12 = vld [vmem:[#allocation7 + $0x50] sm:$0xff] }
 0x4fb   :  { %1692 = vrcp.f32 %v989_v54  ;;  %2954 = vst [vmem:[#allocation34_spill] sm:$0xff] %v2673_v12  ;;  %v2681_v54 = vld [vmem:[#allocation7 + $0x30] sm:$0xff] }
 0x4fc   :  { %2958 = vst [vmem:[#allocation35_spill] sm:$0xff] %v2681_v54 }
 0x505   :  { %v1687_v14 = vpop.eup %1686 }
 0x506   :  { %v1689_v16 = vpop.eup %1688 }
 0x507   :  { %v1691_v61 = vpop.eup %1690  ;;  %v993_v18 = vmul.f32 %v1689_v16, %v1687_v14  ;;  %v2955_v14 = vld [vmem:[#allocation29_spill] sm:$0xff]  ;;  %v2677_v16 = vld [vmem:[#allocation7 + $0x38] sm:$0xff] }
 0x508   :  { %v992_v57 = vmul.f32 %v1691_v61, %v2433_v44  ;;  %v1693_v20 = vpop.eup %1692  ;;  %v2649_v44 = vld [vmem:[#allocation7 + $0xb0] sm:$0xff]  ;;  %2956 = vst [vmem:[#allocation28_spill] sm:$0xff] %v2677_v16  ;;  %v2957_v61 = vld [vmem:[#allocation22_spill] sm:$0xff] }
 0x50a   :  { %v2605_v7 = vadd.f32 %v993_v18, %v992_v57  ;;  %v2959_v18 = vld [vmem:[#allocation31_spill] sm:$0xff]  ;;  %v2685_v57 = vld [vmem:[#allocation7 + $0x18] sm:$0xff] }
 0x50b   :  { %2960 = vst [vmem:[#allocation30_spill] sm:$0xff] %v2685_v57 }
 0x50c   :  { %1694 = vtanh.f32 %v2605_v7 }
 0x519   :  { %v1695_v3 = vpop.eup %1694 }
 0x51a   :  { %v996_v22 = vmul.f32 %v1695_v3, %v1693_v20  ;;  %v2688_v20 = vld [vmem:[#allocation7] sm:$0xff]  ;;  %v2962_v3 = vmov 0.0  }
 0x51b   :  { %2961 = vst [vmem:[#allocation36_spill] sm:$0xff] %v2688_v20 }
 0x51c   :  { %998 = vst [vmem:[#allocation9 + $0x20] sm:$0xff] %v996_v22  ;;  %1069 = vmatmul.mubr.f32.vlgmr.msra.gmra.mxu0 %v996_v22  ;;  %1140 = vmatmul.mubr.f32.vlgmr.msra.gmra.mxu1 %v996_v22  ;;  %v2692_v22 = vld [vmem:[#allocation7 + $0x10] sm:$0xff] }
 0x51d   :  { %1182 = vmatpush1.msra.mxu0 %v2436_v0  ;;  %1253 = vmatpush1.msra.mxu1 %v2439_v1  ;;  %2963 = vst [vmem:[#allocation18_spill] sm:$0xff] %v2692_v22 }
 0x51e   :  { %1183 = vmatprep.subr.mxu0 %v2442_v48  ;;  %1254 = vmatprep.subr.mxu1 %v2445_v50 }
 0x51f   :  { %1184 = vmatpush1.msra.mxu0 %v2448_v46  ;;  %1255 = vmatpush1.msra.mxu1 %v2451_v59 }
 0x520   :  { %1185 = vmatprep.subr.mxu0 %v2454_v60  ;;  %1256 = vmatprep.subr.mxu1 %v2457_v52 }
 0x521   :  { %1186 = vmatpush1.msra.mxu0 %v2460_v9  ;;  %1257 = vmatpush1.msra.mxu1 %v2463_v56 }
 0x522   :  { %1187 = vmatprep.subr.mxu0 %v2466_v62  ;;  %1258 = vmatprep.subr.mxu1 %v2469_v2 }
 0x523   :  { %1188 = vmatpush1.msra.mxu0 %v2472_v4  ;;  %1259 = vmatpush1.msra.mxu1 %v2475_v6 }
 0x524   :  { %1189 = vmatprep.subr.mxu0 %v2478_v8  ;;  %1260 = vmatprep.subr.mxu1 %v2481_v11 }
 0x525   :  { %1190 = vmatpush1.msra.mxu0 %v2484_v13  ;;  %1261 = vmatpush1.msra.mxu1 %v2487_v15 }
 0x526   :  { %1191 = vmatprep.subr.mxu0 %v2490_v17  ;;  %1262 = vmatprep.subr.mxu1 %v2493_v23 }
 0x527   :  { %1192 = vmatpush1.msra.mxu0 %v2496_v24  ;;  %1263 = vmatpush1.msra.mxu1 %v2499_v25 }
 0x528   :  { %1193 = vmatprep.subr.mxu0 %v2502_v26  ;;  %1264 = vmatprep.subr.mxu1 %v2505_v27 }
 0x529   :  { %1194 = vmatpush1.msra.mxu0 %v2508_v28  ;;  %1265 = vmatpush1.msra.mxu1 %v2511_v29 }
 0x52a   :  { %1195 = vmatprep.subr.mxu0 %v2514_v30  ;;  %1266 = vmatprep.subr.mxu1 %v2517_v31 }
 0x52b   :  { %1196 = vmatpush1.msra.mxu0 %v2520_v32  ;;  %1267 = vmatpush1.msra.mxu1 %v2523_v33 }
 0x52c   :  { %1197 = vmatprep.subr.mxu0 %v2526_v34  ;;  %1268 = vmatprep.subr.mxu1 %v2529_v35 }
 0x52d   :  { %1198 = vmatpush1.msra.mxu0 %v2532_v36  ;;  %1269 = vmatpush1.msra.mxu1 %v2535_v37 }
 0x52e   :  { %1199 = vmatprep.subr.mxu0 %v2538_v38  ;;  %1270 = vmatprep.subr.mxu1 %v2541_v39 }
 0x52f   :  { %1200 = vmatpush1.msra.mxu0 %v2544_v40  ;;  %1271 = vmatpush1.msra.mxu1 %v2547_v41 }
 0x530   :  { %1201 = vmatprep.subr.mxu0 %v2550_v43  ;;  %1272 = vmatprep.subr.mxu1 %v2553_v45 }
 0x531   :  { %1202 = vmatpush1.msra.mxu0 %v2556_v47  ;;  %1273 = vmatpush1.msra.mxu1 %v2649_v44 }
 0x532   :  { %1203 = vmatprep.subr.mxu0 %v2560_v55  ;;  %1274 = vmatprep.subr.mxu1 %v2653_v63 }
 0x533   :  { %1204 = vmatpush1.msra.mxu0 %v2564_v42  ;;  %1275 = vmatpush1.msra.mxu1 %v2657_v49 }
 0x534   :  { %1205 = vmatprep.subr.mxu0 %v2568_v53  ;;  %1276 = vmatprep.subr.mxu1 %v2661_v51  ;;  %v1002_v51 = vld [vmem:[#allocation4 + $0xb0] sm:$0xff] }
 0x535   :  { %1206 = vmatpush1.msra.mxu0 %v2949_v5  ;;  %1277 = vmatpush1.msra.mxu1 %v2665_v10  ;;  %v1003_v10 = vld [vmem:[#allocation4 + $0xb8] sm:$0xff] }
 0x536   :  { %1207 = vmatprep.subr.mxu0 %v2951_v19  ;;  %1278 = vmatprep.subr.mxu1 %v2669_v58 }
 0x537   :  { %1208 = vmatpush1.msra.mxu0 %v2953_v21  ;;  %1279 = vmatpush1.msra.mxu1 %v2673_v12 }
 0x538   :  { %1209 = vmatprep.subr.mxu0 %v2955_v14  ;;  %1280 = vmatprep.subr.mxu1 %v2677_v16  ;;  %v1001_v14 = vld [vmem:[#allocation4 + $0xa8] sm:$0xff] }
 0x539   :  { %1210 = vmatpush1.msra.mxu0 %v2957_v61  ;;  %1281 = vmatpush1.msra.mxu1 %v2681_v54  ;;  %v2964_v61 = vld [vmem:[#allocation17_spill] sm:$0xff]  ;;  %v2965_v54 = vld [vmem:[#allocation23_spill] sm:$0xff] }
 0x53a   :  { %1211 = vmatprep.subr.mxu0 %v2959_v18  ;;  %1282 = vmatprep.subr.mxu1 %v2685_v57  ;;  %v1000_v18 = vld [vmem:[#allocation4 + $0xa0] sm:$0xff] }
 0x53b   :  { %1212 = vmatpush1.msra.mxu0 %v2688_v20  ;;  %1245 = vmatprep.mubr.f32.mxu0 %v2962_v3 }
 0x53c   :  { %1283 = vmatpush1.msra.mxu1 %v2692_v22  ;;  %1316 = vmatprep.mubr.f32.mxu1 %v2962_v3 }
 0x53d   :  { %1358 = vmatprep.subr.mxu0 %v2964_v61  ;;  %1429 = vmatprep.subr.mxu1 %v2965_v54 }
 0x5dc   :  { %v1070_v16 = vpop.f32.mrf.mxu0  ;;  %v1141_v20 = vpop.f32.mrf.mxu1 }
 0x5dd   :  { %v1146_v57 = vadd.f32 %v1070_v16, %v1000_v18  ;;  %v1148_v61 = vadd.f32 %v1141_v20, %v1002_v51 }
 0x5de   :  { %v1072_v12 = vpop.f32.mrf.mxu0  ;;  %v1143_v5 = vpop.f32.mrf.mxu1 }
 0x5df   :  { %v1597_v21 = vmul.f32 -1.442695, %v1146_v57  ;;  %v1147_v58 = vadd.f32 %v1072_v12, %v1001_v14  ;;  %v1149_v22 = vadd.f32 %v1143_v5, %v1003_v10 }
 0x5e1   :  { %1696 = vpow2.f32 %v1597_v21  ;;  %v1598_v19 = vmul.f32 -1.442695, %v1147_v58  ;;  %v1599_v3 = vmul.f32 -1.442695, %v1149_v22 }
 0x5e3   :  { %1698 = vpow2.f32 %v1598_v19 }
 0x5e4   :  { %1700 = vpow2.f32 %v1599_v3  ;;  %v1354_v3 = vld [vmem:[#allocation4 + $0xe0] sm:$0xff] }
 0x5ee   :  { %v1697_v53 = vpop.eup %1696 }
 0x5ef   :  { %v1153_v49 = vadd.f32 1.0, %v1697_v53 }
 0x5f0   :  { %v1699_v54 = vpop.eup %1698 }
 0x5f1   :  { %1702 = vrcp.f32 %v1153_v49  ;;  %v1159_v42 = vadd.f32 1.0, %v1699_v54  ;;  %v1701_v16 = vpop.eup %1700 }
 0x5f2   :  { %1704 = vtanh.f32 %v1148_v61  ;;  %v1166_v58 = vadd.f32 1.0, %v1701_v16  ;;  %v1355_v61 = vld [vmem:[#allocation4 + $0xe8] sm:$0xff] }
 0x5f3   :  { %1706 = vrcp.f32 %v1159_v42 }
 0x5f4   :  { %1708 = vrcp.f32 %v1166_v58 }
 0x5fe   :  { %v1703_v12 = vpop.eup %1702 }
 0x5ff   :  { %v1705_v21 = vpop.eup %1704 }
 0x600   :  { %v1707_v14 = vpop.eup %1706  ;;  %v1170_v19 = vmul.f32 %v1705_v21, %v1703_v12 }
 0x601   :  { %v1169_v18 = vmul.f32 %v1707_v14, %v2605_v7  ;;  %v1709_v53 = vpop.eup %1708 }
 0x603   :  { %v2699_v5 = vadd.f32 %v1170_v19, %v1169_v18  ;;  %v1357_v19 = vld [vmem:[#allocation4 + $0xf8] sm:$0xff] }
 0x605   :  { %1710 = vtanh.f32 %v2699_v5 }
 0x612   :  { %v1711_v51 = vpop.eup %1710 }
 0x613   :  { %v1173_v10 = vmul.f32 %v1711_v51, %v1709_v53  ;;  %v1356_v53 = vld [vmem:[#allocation4 + $0xf0] sm:$0xff] }
 0x615   :  { %1175 = vst [vmem:[#allocation9 + $0x28] sm:$0xff] %v1173_v10  ;;  %1246 = vmatmul.mubr.f32.vlgmr.msra.gmra.mxu0 %v1173_v10  ;;  %1317 = vmatmul.mubr.f32.vlgmr.msra.gmra.mxu1 %v1173_v10 }
 0x616   :  { %1359 = vmatpush1.msra.mxu0 %v2436_v0  ;;  %1430 = vmatpush1.msra.mxu1 %v2439_v1  ;;  %v2966_v0 = vld [vmem:[#allocation19_spill] sm:$0xff]  ;;  %v2967_v1 = vld [vmem:[#allocation32_spill] sm:$0xff] }
 0x617   :  { %1360 = vmatprep.subr.mxu0 %v2442_v48  ;;  %1431 = vmatprep.subr.mxu1 %v2445_v50  ;;  %v2968_v48 = vld [vmem:[#allocation25_spill] sm:$0xff]  ;;  %v2969_v50 = vld [vmem:[#allocation24_spill] sm:$0xff] }
 0x618   :  { %1361 = vmatpush1.msra.mxu0 %v2448_v46  ;;  %1432 = vmatpush1.msra.mxu1 %v2451_v59  ;;  %v2970_v46 = vld [vmem:[#allocation20_spill] sm:$0xff]  ;;  %v2971_v59 = vld [vmem:[#allocation33_spill] sm:$0xff] }
 0x619   :  { %1362 = vmatprep.subr.mxu0 %v2454_v60  ;;  %1433 = vmatprep.subr.mxu1 %v2457_v52  ;;  %v2972_v60 = vld [vmem:[#allocation27_spill] sm:$0xff]  ;;  %v2973_v52 = vld [vmem:[#allocation26_spill] sm:$0xff] }
 0x61a   :  { %1363 = vmatpush1.msra.mxu0 %v2460_v9  ;;  %1434 = vmatpush1.msra.mxu1 %v2463_v56  ;;  %v2974_v9 = vld [vmem:[#allocation21_spill] sm:$0xff]  ;;  %v2975_v56 = vld [vmem:[#allocation34_spill] sm:$0xff] }
 0x61b   :  { %1364 = vmatprep.subr.mxu0 %v2466_v62  ;;  %1435 = vmatprep.subr.mxu1 %v2469_v2  ;;  %v2976_v62 = vld [vmem:[#allocation29_spill] sm:$0xff]  ;;  %v2977_v2 = vld [vmem:[#allocation28_spill] sm:$0xff] }
 0x61c   :  { %1365 = vmatpush1.msra.mxu0 %v2472_v4  ;;  %1436 = vmatpush1.msra.mxu1 %v2475_v6  ;;  %v2978_v4 = vld [vmem:[#allocation22_spill] sm:$0xff]  ;;  %v2979_v6 = vld [vmem:[#allocation35_spill] sm:$0xff] }
 0x61d   :  { %1366 = vmatprep.subr.mxu0 %v2478_v8  ;;  %1437 = vmatprep.subr.mxu1 %v2481_v11  ;;  %v2980_v8 = vld [vmem:[#allocation31_spill] sm:$0xff]  ;;  %v2981_v11 = vld [vmem:[#allocation30_spill] sm:$0xff] }
 0x61e   :  { %1367 = vmatpush1.msra.mxu0 %v2484_v13  ;;  %1438 = vmatpush1.msra.mxu1 %v2487_v15  ;;  %v2982_v13 = vld [vmem:[#allocation36_spill] sm:$0xff]  ;;  %v2983_v15 = vmov 0.0  }
 0x61f   :  { %1368 = vmatprep.subr.mxu0 %v2490_v17  ;;  %1439 = vmatprep.subr.mxu1 %v2493_v23  ;;  %v2984_v17 = vld [vmem:[#allocation18_spill] sm:$0xff]  ;;  %v1177_v23 = vld [vmem:[#allocation4 + $0xc0] sm:$0xff] }
 0x620   :  { %1369 = vmatpush1.msra.mxu0 %v2496_v24  ;;  %1440 = vmatpush1.msra.mxu1 %v2499_v25  ;;  %v1178_v25 = vld [vmem:[#allocation4 + $0xc8] sm:$0xff] }
 0x621   :  { %1370 = vmatprep.subr.mxu0 %v2502_v26  ;;  %1441 = vmatprep.subr.mxu1 %v2505_v27 }
 0x622   :  { %1371 = vmatpush1.msra.mxu0 %v2508_v28  ;;  %1442 = vmatpush1.msra.mxu1 %v2511_v29 }
 0x623   :  { %1372 = vmatprep.subr.mxu0 %v2514_v30  ;;  %1443 = vmatprep.subr.mxu1 %v2517_v31 }
 0x624   :  { %1373 = vmatpush1.msra.mxu0 %v2520_v32  ;;  %1444 = vmatpush1.msra.mxu1 %v2523_v33  ;;  %v1180_v32 = vld [vmem:[#allocation4 + $0xd8] sm:$0xff] }
 0x625   :  { %1374 = vmatprep.subr.mxu0 %v2526_v34  ;;  %1445 = vmatprep.subr.mxu1 %v2529_v35  ;;  %v1179_v35 = vld [vmem:[#allocation4 + $0xd0] sm:$0xff] }
 0x626   :  { %1375 = vmatpush1.msra.mxu0 %v2532_v36  ;;  %1446 = vmatpush1.msra.mxu1 %v2535_v37 }
 0x627   :  { %1376 = vmatprep.subr.mxu0 %v2538_v38  ;;  %1447 = vmatprep.subr.mxu1 %v2541_v39 }
 0x628   :  { %1377 = vmatpush1.msra.mxu0 %v2544_v40  ;;  %1448 = vmatpush1.msra.mxu1 %v2547_v41 }
 0x629   :  { %1378 = vmatprep.subr.mxu0 %v2550_v43  ;;  %1449 = vmatprep.subr.mxu1 %v2553_v45 }
 0x62a   :  { %1379 = vmatpush1.msra.mxu0 %v2556_v47  ;;  %1450 = vmatpush1.msra.mxu1 %v2649_v44 }
 0x62b   :  { %1380 = vmatprep.subr.mxu0 %v2560_v55  ;;  %1451 = vmatprep.subr.mxu1 %v2653_v63 }
 0x62c   :  { %1381 = vmatpush1.msra.mxu0 %v2966_v0  ;;  %1452 = vmatpush1.msra.mxu1 %v2967_v1 }
 0x62d   :  { %1382 = vmatprep.subr.mxu0 %v2968_v48  ;;  %1453 = vmatprep.subr.mxu1 %v2969_v50 }
 0x62e   :  { %1383 = vmatpush1.msra.mxu0 %v2970_v46  ;;  %1454 = vmatpush1.msra.mxu1 %v2971_v59 }
 0x62f   :  { %1384 = vmatprep.subr.mxu0 %v2972_v60  ;;  %1455 = vmatprep.subr.mxu1 %v2973_v52 }
 0x630   :  { %1385 = vmatpush1.msra.mxu0 %v2974_v9  ;;  %1456 = vmatpush1.msra.mxu1 %v2975_v56 }
 0x631   :  { %1386 = vmatprep.subr.mxu0 %v2976_v62  ;;  %1457 = vmatprep.subr.mxu1 %v2977_v2 }
 0x632   :  { %1387 = vmatpush1.msra.mxu0 %v2978_v4  ;;  %1458 = vmatpush1.msra.mxu1 %v2979_v6 }
 0x633   :  { %1388 = vmatprep.subr.mxu0 %v2980_v8  ;;  %1459 = vmatprep.subr.mxu1 %v2981_v11 }
 0x634   :  { %1389 = vmatpush1.msra.mxu0 %v2982_v13  ;;  %1422 = vmatprep.mubr.f32.mxu0 %v2983_v15 }
 0x635   :  { %1460 = vmatpush1.msra.mxu1 %v2984_v17  ;;  %1493 = vmatprep.mubr.f32.mxu1 %v2983_v15 }
 0x6d5   :  { %v1247_v24 = vpop.f32.mrf.mxu0  ;;  %v1318_v30 = vpop.f32.mrf.mxu1 }
 0x6d6   :  { %v1323_v26 = vadd.f32 %v1247_v24, %v1177_v23  ;;  %v1325_v38 = vadd.f32 %v1318_v30, %v1179_v35 }
 0x6d7   :  { %v1249_v27 = vpop.f32.mrf.mxu0  ;;  %v1320_v33 = vpop.f32.mrf.mxu1 }
 0x6d8   :  { %v1600_v28 = vmul.f32 -1.442695, %v1323_v26  ;;  %v1324_v29 = vadd.f32 %v1249_v27, %v1178_v25  ;;  %v1326_v34 = vadd.f32 %v1320_v33, %v1180_v32 }
 0x6da   :  { %1712 = vpow2.f32 %v1600_v28  ;;  %v1601_v31 = vmul.f32 -1.442695, %v1324_v29  ;;  %v1602_v36 = vmul.f32 -1.442695, %v1326_v34 }
 0x6dc   :  { %1714 = vpow2.f32 %v1601_v31 }
 0x6dd   :  { %1716 = vpow2.f32 %v1602_v36 }
 0x6e7   :  { %v1713_v37 = vpop.eup %1712 }
 0x6e8   :  { %v1330_v39 = vadd.f32 1.0, %v1713_v37 }
 0x6e9   :  { %v1715_v40 = vpop.eup %1714 }
 0x6ea   :  { %1718 = vrcp.f32 %v1330_v39  ;;  %v1336_v41 = vadd.f32 1.0, %v1715_v40  ;;  %v1717_v43 = vpop.eup %1716 }
 0x6eb   :  { %1720 = vtanh.f32 %v1325_v38  ;;  %v1343_v42 = vadd.f32 1.0, %v1717_v43 }
 0x6ec   :  { %1722 = vrcp.f32 %v1336_v41 }
 0x6ed   :  { %1724 = vrcp.f32 %v1343_v42 }
 0x6f7   :  { %v1719_v45 = vpop.eup %1718 }
 0x6f8   :  { %v1721_v47 = vpop.eup %1720 }
 0x6f9   :  { %v1723_v55 = vpop.eup %1722  ;;  %v1347_v7 = vmul.f32 %v1721_v47, %v1719_v45 }
 0x6fa   :  { %v1346_v44 = vmul.f32 %v1723_v55, %v2699_v5  ;;  %v1725_v49 = vpop.eup %1724 }
 0x6fc   :  { %v1348_v63 = vadd.f32 %v1347_v7, %v1346_v44 }
 0x6fe   :  { %1726 = vtanh.f32 %v1348_v63 }
 0x70b   :  { %v1727_v57 = vpop.eup %1726 }
 0x70c   :  { %v1350_v20 = vmul.f32 %v1727_v57, %v1725_v49 }
 0x70e   :  { %1352 = vst [vmem:[#allocation9 + $0x30] sm:$0xff] %v1350_v20  ;;  %1423 = vmatmul.mubr.f32.vlgmr.msra.gmra.mxu0 %v1350_v20  ;;  %1494 = vmatmul.mubr.f32.vlgmr.msra.gmra.mxu1 %v1350_v20 }
 0x7ce   :  { %v1424_v22 = vpop.f32.mrf.mxu0  ;;  %v1495_v14 = vpop.f32.mrf.mxu1 }
 0x7cf   :  { %v1500_v54 = vadd.f32 %v1424_v22, %v1354_v3  ;;  %v1502_v0 = vadd.f32 %v1495_v14, %v1356_v53 }
 0x7d0   :  { %v1426_v16 = vpop.f32.mrf.mxu0  ;;  %v1497_v18 = vpop.f32.mrf.mxu1 }
 0x7d1   :  { %v1603_v12 = vmul.f32 -1.442695, %v1500_v54  ;;  %v1501_v21 = vadd.f32 %v1426_v16, %v1355_v61  ;;  %v1503_v5 = vadd.f32 %v1497_v18, %v1357_v19 }
 0x7d3   :  { %1728 = vpow2.f32 %v1603_v12  ;;  %v1604_v58 = vmul.f32 -1.442695, %v1501_v21  ;;  %v1605_v51 = vmul.f32 -1.442695, %v1503_v5 }
 0x7d5   :  { %1730 = vpow2.f32 %v1604_v58 }
 0x7d6   :  { %1732 = vpow2.f32 %v1605_v51 }
 0x7e0   :  { %v1729_v10 = vpop.eup %1728 }
 0x7e1   :  { %v1507_v1 = vadd.f32 1.0, %v1729_v10 }
 0x7e2   :  { %v1731_v48 = vpop.eup %1730 }
 0x7e3   :  { %1734 = vrcp.f32 %v1507_v1  ;;  %v1513_v50 = vadd.f32 1.0, %v1731_v48  ;;  %v1733_v46 = vpop.eup %1732 }
 0x7e4   :  { %1736 = vtanh.f32 %v1502_v0  ;;  %v1520_v9 = vadd.f32 1.0, %v1733_v46 }
 0x7e5   :  { %1738 = vrcp.f32 %v1513_v50 }
 0x7e6   :  { %1740 = vrcp.f32 %v1520_v9 }
 0x7f0   :  { %v1735_v59 = vpop.eup %1734 }
 0x7f1   :  { %v1737_v60 = vpop.eup %1736 }
 0x7f2   :  { %v1739_v52 = vpop.eup %1738  ;;  %v1524_v56 = vmul.f32 %v1737_v60, %v1735_v59 }
 0x7f3   :  { %v1523_v62 = vmul.f32 %v1739_v52, %v1348_v63  ;;  %v1741_v4 = vpop.eup %1740 }
 0x7f5   :  { %v1525_v2 = vadd.f32 %v1524_v56, %v1523_v62 }
 0x7f7   :  { %1742 = vtanh.f32 %v1525_v2  ;;  %1536 = vst [vmem:[#allocation12] sm:$0xff] %v1525_v2 }
 0x804   :  { %v1743_v6 = vpop.eup %1742 }
 0x805   :  { %v1527_v8 = vmul.f32 %v1743_v6, %v1741_v4 }
 0x807   :  { %1529 = vst [vmem:[#allocation9 + $0x38] sm:$0xff] %v1527_v8  ;;  %1535 = vst [vmem:[#allocation10] sm:$0xff] %v1527_v8 }
 0x808   :  { %1859 = shalt.err (!%p1856_p0)
}
 0x809   :  { %1558 = dma.vmem_to_hbm [thread:$0]  %s1556_s1, 128, %s2779_s3, [#allocation11]  }
 0x80a   :  { %s1868_s8 = scalar_lea.vmem %s1543_s28, 1024  ;;  %p1873_p2 = scmp.lt.s32.totalorder %s1543_s28, %s1543_s28 }
 0x80b   :  { %p1869_p1 = scmp.ne.s32.totalorder %s1543_s28, %s1868_s8  ;;  %p1874_p3 = scmp.lt.s32.totalorder %s1868_s8, %s1868_s8 }
 0x80d   :  { %p1875_p4 = por %p1874_p3, %p1873_p2 }
 0x80f   :  { %p1876_p5 = pnand %p1875_p4, %p1869_p1 }
 0x811   :  { %1879 = shalt.err (!%p1876_p5)
}
 0x812   :  { %s1924_s9 = smov 128   ;;  %s1925_s10 = smov 8  }
 0x813   :  { %1548 = dma.vmem_to_hbm [thread:$0]  %s1543_s28, 1024, %s2778_s2, [#allocation6], %s1924_s9, %s1924_s9, %s1925_s10  }
 0x814   :  { %s1888_s13 = scalar_lea.vmem %s1566_s30, 128  ;;  %p1893_p7 = scmp.lt.s32.totalorder %s1566_s30, %s1566_s30 }
 0x815   :  { %p1889_p6 = scmp.ne.s32.totalorder %s1566_s30, %s1888_s13  ;;  %p1894_p8 = scmp.lt.s32.totalorder %s1888_s13, %s1888_s13 }
 0x817   :  { %p1895_p9 = por %p1894_p8, %p1893_p7 }
 0x819   :  { %p1896_p10 = pnand %p1895_p9, %p1889_p6 }
 0x81b   :  { %1899 = shalt.err (!%p1896_p10)
}
 0x81c   :  { %1568 = dma.vmem_to_hbm [thread:$0]  %s1566_s30, 128, %s2780_s4, [#allocation11]  }
 0x81d   :  { %1912 = dma.done.wait [#allocation6], 1024  }
 0x81e   :  { %1913 = vsyncadd [#allocation6], 4294966272 }
 0x81f   :  { %1914 = dma.done.wait [#allocation11], 256  }
 0x820   :  { %1915 = vsyncadd [#allocation11], 4294967040 }
 0x821   :  { %1578 = vsyncpa [#allocation5], 1 }
 0x822   :  { %1579 = vsyncpa [#allocation8], 1 }
 0x823   :  { %1580 = vsyncpa [#allocation6], 1 }
 0x824   :  { %1581 = vsyncpa [#allocation11], 1 }

</bundles_post_ra>
